<compile_context>
chip_gen: v6e
topology: v6e:2x2x1
jax: 0.10.0
libtpu: 0.0.40
codegen_flags: <defaults>
</compile_context>

<pallas_src>
import jax
import jax.numpy as jnp
from jax.experimental import pallas as pl
from jax.experimental.pallas import tpu as pltpu


# ----------------------------- Pallas kernel ---------------------------------

def mlp_fused_kernel(x_ref,
                     w1_ref, b1_ref, w2_ref, b2_ref, w3_ref, b3_ref,
                     w4_ref, b4_ref, w5_ref, b5_ref, w6_ref, b6_ref,
                     o_ref):
    """Whole-network fused MLP forward (eval mode), everything resident in VMEM.

    x_ref  : (B, D0_pad)      f32 flattened (and zero-padded) input
    wN_ref : (DinN_pad, DoutN_pad) bf16 weights (in-major, so y = x @ W)
    bN_ref : (1, DoutN_pad)   f32 biases (zero in padded columns)
    o_ref  : (B, D6_pad)      f32 padded logits
    """

    def dense(h, w_ref, b_ref, relu):
        # bf16 MXU matmul, f32 accumulation; bias add + (optional) ReLU on the VPU.
        y = jnp.dot(h.astype(w_ref.dtype), w_ref[...],
                    preferred_element_type=jnp.float32) + b_ref[...]
        return jnp.maximum(y, 0.0) if relu else y

    h = x_ref[...]
    # dropout1..4 are identity at inference.
    h = dense(h, w1_ref, b1_ref, relu=True)   # layer1 -> dropout1 -> relu
    h = dense(h, w2_ref, b2_ref, relu=True)   # layer2 -> dropout2 -> relu
    h = dense(h, w3_ref, b3_ref, relu=True)   # layer3 -> dropout3 -> relu
    h = dense(h, w4_ref, b4_ref, relu=True)   # layer4 -> dropout4 -> relu
    h = dense(h, w5_ref, b5_ref, relu=True)   # layer5 -> relu
    o_ref[...] = dense(h, w6_ref, b6_ref, relu=False)   # layer6 (no relu)


# ------------------------------ wrapper ---------------------------------------

def _round_up(n, m=128):
    return (n + m - 1) // m * m


def init_params(key, input_size, output_size):
    """Create bf16 (in, out) weights + f32 (1, out) biases, zero-padded to lane width."""
    dims = [input_size, 512, 512, 256, 256, 64, output_size]
    pdims = [_round_up(d) for d in dims]
    keys = jax.random.split(key, len(dims) - 1)
    layers = []
    for i, k in enumerate(keys):
        fin, fout = dims[i], dims[i + 1]
        pin, pout = pdims[i], pdims[i + 1]
        kw, kb = jax.random.split(k)
        bound = (1.0 / fin) ** 0.5                     # torch nn.Linear-style init scale
        w = jax.random.uniform(kw, (fin, fout), jnp.float32, -bound, bound)
        b = jax.random.uniform(kb, (fout,), jnp.float32, -bound, bound)
        wp = jnp.zeros((pin, pout), jnp.float32).at[:fin, :fout].set(w)
        bp = jnp.zeros((1, pout), jnp.float32).at[0, :fout].set(b)
        layers.append((wp.astype(jnp.bfloat16), bp))   # bf16 weights, f32 bias
    return layers


def mlp_forward(layers, x, output_size):
    """Inference forward pass matching MLP.forward (dropout = identity)."""
    B = x.shape[0]
    xf = x.reshape(B, -1).astype(jnp.float32)          # nn.Flatten: (B, C*H*W)
    pin = layers[0][0].shape[0]
    if xf.shape[1] != pin:                             # pad features to lane multiple
        xf = jnp.pad(xf, ((0, 0), (0, pin - xf.shape[1])))
    flat = [a for layer in layers for a in layer]      # w1, b1, ..., w6, b6
    n_pad = layers[-1][0].shape[1]
    out = pl.pallas_call(
        mlp_fused_kernel,
        out_shape=jax.ShapeDtypeStruct((B, n_pad), jnp.float32),
        in_specs=[pl.BlockSpec(memory_space=pltpu.MemorySpace.VMEM)] * (1 + len(flat)),
        out_specs=pl.BlockSpec(memory_space=pltpu.MemorySpace.VMEM),
    )(xf, *flat)
    return out[:, :output_size]


# ------------------------------- main ------------------------------------------

if __name__ == "__main__":
    B, C, H, W = 2, 4, 16, 16                          # input_size = 4*16*16 = 1024
    OUTPUT_SIZE = 10
    key = jax.random.PRNGKey(0)
    kx, kp = jax.random.split(key)

    x = jax.random.normal(kx, (B, C, H, W), jnp.float32)
    layers = init_params(kp, input_size=C * H * W, output_size=OUTPUT_SIZE)

    out = jax.block_until_ready(mlp_forward(layers, x, OUTPUT_SIZE))
    assert out.shape == (B, OUTPUT_SIZE) and out.dtype == jnp.float32
    print("KERNEL_OK")
</pallas_src>

<mosaic_0001>
module attributes {stable_mosaic.version = 11 : i64} {
  func.func @mlp_fused_kernel(%arg0: memref<2x1024xf32, #tpu.memory_space<vmem>>, %arg1: memref<1024x512xbf16, #tpu.memory_space<vmem>>, %arg2: memref<1x512xf32, #tpu.memory_space<vmem>>, %arg3: memref<512x512xbf16, #tpu.memory_space<vmem>>, %arg4: memref<1x512xf32, #tpu.memory_space<vmem>>, %arg5: memref<512x256xbf16, #tpu.memory_space<vmem>>, %arg6: memref<1x256xf32, #tpu.memory_space<vmem>>, %arg7: memref<256x256xbf16, #tpu.memory_space<vmem>>, %arg8: memref<1x256xf32, #tpu.memory_space<vmem>>, %arg9: memref<256x128xbf16, #tpu.memory_space<vmem>>, %arg10: memref<1x128xf32, #tpu.memory_space<vmem>>, %arg11: memref<128x128xbf16, #tpu.memory_space<vmem>>, %arg12: memref<1x128xf32, #tpu.memory_space<vmem>>, %arg13: memref<2x128xf32, #tpu.memory_space<vmem>>) attributes {dimension_semantics = [], scalar_prefetch = 0 : i64, scratch_operands = 0 : i64, tpu.core_type = #tpu.core_type<tc>} {
    %c0 = arith.constant 0 : index
    %c0_0 = arith.constant 0 : index
    %0 = vector.load %arg0[%c0, %c0_0] : memref<2x1024xf32, #tpu.memory_space<vmem>>, vector<2x1024xf32>
    %1 = arith.truncf %0 : vector<2x1024xf32> to vector<2x1024xbf16>
    %c0_1 = arith.constant 0 : index
    %c0_2 = arith.constant 0 : index
    %2 = vector.load %arg1[%c0_1, %c0_2] : memref<1024x512xbf16, #tpu.memory_space<vmem>>, vector<1024x512xbf16>
    %cst = arith.constant dense<0.000000e+00> : vector<2x512xf32>
    %3 = tpu.matmul %1, %2, %cst {dimension_numbers = #tpu.dot_dimension_numbers<[1], [0], [0], [1], [0, 0, 1, 1], [], []>} : vector<2x1024xbf16>, vector<1024x512xbf16>, vector<2x512xf32> -> vector<2x512xf32>
    %c0_3 = arith.constant 0 : index
    %c0_4 = arith.constant 0 : index
    %4 = vector.load %arg2[%c0_3, %c0_4] : memref<1x512xf32, #tpu.memory_space<vmem>>, vector<1x512xf32>
    %5 = vector.broadcast %4 : vector<1x512xf32> to vector<2x512xf32>
    %6 = arith.addf %3, %5 : vector<2x512xf32>
    %cst_5 = arith.constant 0.000000e+00 : f32
    %7 = vector.broadcast %cst_5 : f32 to vector<2x512xf32>
    %8 = arith.maximumf %6, %7 : vector<2x512xf32>
    %9 = arith.truncf %8 : vector<2x512xf32> to vector<2x512xbf16>
    %c0_6 = arith.constant 0 : index
    %c0_7 = arith.constant 0 : index
    %10 = vector.load %arg3[%c0_6, %c0_7] : memref<512x512xbf16, #tpu.memory_space<vmem>>, vector<512x512xbf16>
    %cst_8 = arith.constant dense<0.000000e+00> : vector<2x512xf32>
    %11 = tpu.matmul %9, %10, %cst_8 {dimension_numbers = #tpu.dot_dimension_numbers<[1], [0], [0], [1], [0, 0, 1, 1], [], []>} : vector<2x512xbf16>, vector<512x512xbf16>, vector<2x512xf32> -> vector<2x512xf32>
    %c0_9 = arith.constant 0 : index
    %c0_10 = arith.constant 0 : index
    %12 = vector.load %arg4[%c0_9, %c0_10] : memref<1x512xf32, #tpu.memory_space<vmem>>, vector<1x512xf32>
    %13 = vector.broadcast %12 : vector<1x512xf32> to vector<2x512xf32>
    %14 = arith.addf %11, %13 : vector<2x512xf32>
    %cst_11 = arith.constant 0.000000e+00 : f32
    %15 = vector.broadcast %cst_11 : f32 to vector<2x512xf32>
    %16 = arith.maximumf %14, %15 : vector<2x512xf32>
    %17 = arith.truncf %16 : vector<2x512xf32> to vector<2x512xbf16>
    %c0_12 = arith.constant 0 : index
    %c0_13 = arith.constant 0 : index
    %18 = vector.load %arg5[%c0_12, %c0_13] : memref<512x256xbf16, #tpu.memory_space<vmem>>, vector<512x256xbf16>
    %cst_14 = arith.constant dense<0.000000e+00> : vector<2x256xf32>
    %19 = tpu.matmul %17, %18, %cst_14 {dimension_numbers = #tpu.dot_dimension_numbers<[1], [0], [0], [1], [0, 0, 1, 1], [], []>} : vector<2x512xbf16>, vector<512x256xbf16>, vector<2x256xf32> -> vector<2x256xf32>
    %c0_15 = arith.constant 0 : index
    %c0_16 = arith.constant 0 : index
    %20 = vector.load %arg6[%c0_15, %c0_16] : memref<1x256xf32, #tpu.memory_space<vmem>>, vector<1x256xf32>
    %21 = vector.broadcast %20 : vector<1x256xf32> to vector<2x256xf32>
    %22 = arith.addf %19, %21 : vector<2x256xf32>
    %cst_17 = arith.constant 0.000000e+00 : f32
    %23 = vector.broadcast %cst_17 : f32 to vector<2x256xf32>
    %24 = arith.maximumf %22, %23 : vector<2x256xf32>
    %25 = arith.truncf %24 : vector<2x256xf32> to vector<2x256xbf16>
    %c0_18 = arith.constant 0 : index
    %c0_19 = arith.constant 0 : index
    %26 = vector.load %arg7[%c0_18, %c0_19] : memref<256x256xbf16, #tpu.memory_space<vmem>>, vector<256x256xbf16>
    %cst_20 = arith.constant dense<0.000000e+00> : vector<2x256xf32>
    %27 = tpu.matmul %25, %26, %cst_20 {dimension_numbers = #tpu.dot_dimension_numbers<[1], [0], [0], [1], [0, 0, 1, 1], [], []>} : vector<2x256xbf16>, vector<256x256xbf16>, vector<2x256xf32> -> vector<2x256xf32>
    %c0_21 = arith.constant 0 : index
    %c0_22 = arith.constant 0 : index
    %28 = vector.load %arg8[%c0_21, %c0_22] : memref<1x256xf32, #tpu.memory_space<vmem>>, vector<1x256xf32>
    %29 = vector.broadcast %28 : vector<1x256xf32> to vector<2x256xf32>
    %30 = arith.addf %27, %29 : vector<2x256xf32>
    %cst_23 = arith.constant 0.000000e+00 : f32
    %31 = vector.broadcast %cst_23 : f32 to vector<2x256xf32>
    %32 = arith.maximumf %30, %31 : vector<2x256xf32>
    %33 = arith.truncf %32 : vector<2x256xf32> to vector<2x256xbf16>
    %c0_24 = arith.constant 0 : index
    %c0_25 = arith.constant 0 : index
    %34 = vector.load %arg9[%c0_24, %c0_25] : memref<256x128xbf16, #tpu.memory_space<vmem>>, vector<256x128xbf16>
    %cst_26 = arith.constant dense<0.000000e+00> : vector<2x128xf32>
    %35 = tpu.matmul %33, %34, %cst_26 {dimension_numbers = #tpu.dot_dimension_numbers<[1], [0], [0], [1], [0, 0, 1, 1], [], []>} : vector<2x256xbf16>, vector<256x128xbf16>, vector<2x128xf32> -> vector<2x128xf32>
    %c0_27 = arith.constant 0 : index
    %c0_28 = arith.constant 0 : index
    %36 = vector.load %arg10[%c0_27, %c0_28] : memref<1x128xf32, #tpu.memory_space<vmem>>, vector<1x128xf32>
    %37 = vector.broadcast %36 : vector<1x128xf32> to vector<2x128xf32>
    %38 = arith.addf %35, %37 : vector<2x128xf32>
    %cst_29 = arith.constant 0.000000e+00 : f32
    %39 = vector.broadcast %cst_29 : f32 to vector<2x128xf32>
    %40 = arith.maximumf %38, %39 : vector<2x128xf32>
    %41 = arith.truncf %40 : vector<2x128xf32> to vector<2x128xbf16>
    %c0_30 = arith.constant 0 : index
    %c0_31 = arith.constant 0 : index
    %42 = vector.load %arg11[%c0_30, %c0_31] : memref<128x128xbf16, #tpu.memory_space<vmem>>, vector<128x128xbf16>
    %cst_32 = arith.constant dense<0.000000e+00> : vector<2x128xf32>
    %43 = tpu.matmul %41, %42, %cst_32 {dimension_numbers = #tpu.dot_dimension_numbers<[1], [0], [0], [1], [0, 0, 1, 1], [], []>} : vector<2x128xbf16>, vector<128x128xbf16>, vector<2x128xf32> -> vector<2x128xf32>
    %c0_33 = arith.constant 0 : index
    %c0_34 = arith.constant 0 : index
    %44 = vector.load %arg12[%c0_33, %c0_34] : memref<1x128xf32, #tpu.memory_space<vmem>>, vector<1x128xf32>
    %45 = vector.broadcast %44 : vector<1x128xf32> to vector<2x128xf32>
    %46 = arith.addf %43, %45 : vector<2x128xf32>
    %c0_35 = arith.constant 0 : index
    %c0_36 = arith.constant 0 : index
    %47 = vector.load %arg13[%c0_35, %c0_36] : memref<2x128xf32, #tpu.memory_space<vmem>>, vector<2x128xf32>
    tpu.vector_store %arg13[%c0_35, %c0_36], %46 {strides = array<i32>} : memref<2x128xf32, #tpu.memory_space<vmem>>, vector<2x128xf32>,
    return
  }
}

</mosaic_0001>

<bundles_post_ra>
// kernel: tpu_custom_call.1
= control target key start
LH: loop header
LB: loop body
LE: loop exit
PB: predicated region body
PF: predicated region fallthrough
CT: control target
= control target key end

     0   :  { %18 = vsyncpa [#allocation3], 0  ;;  %s5858_s0 = inlined_call_operand.hbm [shape: f32[2,1024], index: 0, kind: input, shape index: {}]   ;;  %s5859_s1 = inlined_call_operand.hbm [shape: bf16[1024,512], index: 1, kind: input, shape index: {}]   ;;  %s5860_s2 = inlined_call_operand.hbm [shape: f32[1,512], index: 2, kind: input, shape index: {}]   ;;  %s5861_s3 = inlined_call_operand.hbm [shape: bf16[512,512], index: 3, kind: input, shape index: {}]   ;;  %s5862_s4 = inlined_call_operand.vmem [shape: f32[1,512], index: 4, kind: input, shape index: {}]   ;;  %s5863_s5 = inlined_call_operand.hbm [shape: bf16[512,256], index: 5, kind: input, shape index: {}]   ;;  %s5864_s6 = inlined_call_operand.vmem [shape: f32[1,256], index: 6, kind: input, shape index: {}]   ;;  %s5865_s7 = inlined_call_operand.hbm [shape: bf16[256,256], index: 7, kind: input, shape index: {}]   ;;  %s5866_s8 = inlined_call_operand.vmem [shape: f32[1,256], index: 8, kind: input, shape index: {}]   ;;  %s5867_s9 = inlined_call_operand.hbm [shape: bf16[256,128], index: 9, kind: input, shape index: {}]   ;;  %s5868_s10 = inlined_call_operand.vmem [shape: f32[1,128], index: 10, kind: input, shape index: {}]   ;;  %s5869_s11 = inlined_call_operand.hbm [shape: bf16[128,128], index: 11, kind: input, shape index: {}]   ;;  %s5870_s12 = inlined_call_operand.vmem [shape: f32[1,128], index: 12, kind: input, shape index: {}]   ;;  %s5871_s13 = inlined_call_operand.hbm [shape: f32[2,128], index: 13, kind: output, shape index: {}]  }
   0x1   :  { %19 = vsyncpa [#allocation6], 0 }
   0x2   :  { %20 = vsyncpa [#allocation9], 0 }
   0x3   :  { %21 = vsyncpa [#allocation12], 0 }
   0x4   :  { %22 = vsyncpa [#allocation15], 0 }
   0x5   :  { %23 = vsyncpa [#allocation4], 0  ;;  %s5613_s25 = smov [#allocation5]  }
   0x6   :  { %s39_s26 = sshll.u32 %s5613_s25, 4  ;;  %s40_s26 = int_to_ptr.vmem [resolvable:$true] %s39_s26 }
   0x7   :  { %s5429_s27 = scalar_lea.vmem %s40_s26, 32768  ;;  %p5434_p1 = scmp.lt.s32.totalorder %s40_s26, %s40_s26 }
   0x8   :  { %p5430_p0 = scmp.ne.s32.totalorder %s40_s26, %s5429_s27  ;;  %p5435_p2 = scmp.lt.s32.totalorder %s5429_s27, %s5429_s27 }
   0xa   :  { %p5436_p3 = por %p5435_p2, %p5434_p1 }
   0xc   :  { %p5437_p4 = pnand %p5436_p3, %p5430_p0 }
   0xe   :  { %5440 = shalt.err (!%p5437_p4)
}
   0xf   :  { %s5614_s28 = smov 256   ;;  %s5615_s29 = smov 16  }
  0x10   :  { %45 = dma.hbm_to_vmem [thread:$0]  %s5859_s1, 32768, %s40_s26, [#allocation6], %s5614_s28, %s5614_s28, %s5615_s29  }
  0x11   :  { %s5616_s15 = smov [#allocation8]  }
  0x12   :  { %s61_s16 = sshll.u32 %s5616_s15, 4  ;;  %s62_s16 = int_to_ptr.vmem [resolvable:$true] %s61_s16 }
  0x13   :  { %s5449_s17 = scalar_lea.vmem %s62_s16, 16384  ;;  %p5454_p6 = scmp.lt.s32.totalorder %s62_s16, %s62_s16 }
  0x14   :  { %p5450_p5 = scmp.ne.s32.totalorder %s62_s16, %s5449_s17  ;;  %p5455_p7 = scmp.lt.s32.totalorder %s5449_s17, %s5449_s17 }
  0x16   :  { %p5456_p8 = por %p5455_p7, %p5454_p6 }
  0x18   :  { %p5457_p9 = pnand %p5456_p8, %p5450_p5 }
  0x1a   :  { %5460 = shalt.err (!%p5457_p9)
}
  0x1b   :  { %67 = dma.hbm_to_vmem [thread:$0]  %s5861_s3, 16384, %s62_s16, [#allocation9], %s5614_s28, %s5614_s28, %s5615_s29  }
  0x1c   :  { %s5617_s20 = smov [#allocation11]   ;;  %s5618_s22 = smov [#allocation2]  }
  0x1d   :  { %s89_s21 = sshll.u32 %s5617_s20, 4  ;;  %s30_s23 = sshll.u32 %s5618_s22, 4  ;;  %s90_s21 = int_to_ptr.vmem [resolvable:$true] %s89_s21  ;;  %s31_s23 = int_to_ptr.vmem [resolvable:$true] %s30_s23 }
  0x1e   :  { %s5469_s1 = scalar_lea.vmem %s90_s21, 4096  ;;  %p5474_p11 = scmp.lt.s32.totalorder %s90_s21, %s90_s21 }
  0x1f   :  { %p5470_p10 = scmp.ne.s32.totalorder %s90_s21, %s5469_s1  ;;  %p5475_p12 = scmp.lt.s32.totalorder %s5469_s1, %s5469_s1 }
  0x21   :  { %p5476_p13 = por %p5475_p12, %p5474_p11 }
  0x23   :  { %p5477_p0 = pnand %p5476_p13, %p5470_p10 }
  0x25   :  { %5480 = shalt.err (!%p5477_p0)
}
  0x26   :  { %s5619_s24 = smov 128   ;;  %s5620_s25 = smov 8  }
  0x27   :  { %95 = dma.hbm_to_vmem [thread:$0]  %s5865_s7, 4096, %s90_s21, [#allocation12], %s5619_s24, %s5619_s24, %s5620_s25  }
  0x28   :  { %s5489_s27 = scalar_lea.vmem %s31_s23, 256  ;;  %p5494_p2 = scmp.lt.s32.totalorder %s31_s23, %s31_s23 }
  0x29   :  { %p5490_p1 = scmp.ne.s32.totalorder %s31_s23, %s5489_s27  ;;  %p5495_p3 = scmp.lt.s32.totalorder %s5489_s27, %s5489_s27 }
  0x2b   :  { %p5496_p4 = por %p5495_p3, %p5494_p2 }
  0x2d   :  { %p5497_p5 = pnand %p5496_p4, %p5490_p1 }
  0x2f   :  { %5500 = shalt.err (!%p5497_p5)
}
  0x30   :  { %33 = dma.hbm_to_vmem [thread:$0]  %s5858_s0, 256, %s31_s23, [#allocation3]  }
  0x31   :  { %s5621_s30 = smov [#allocation7]   ;;  %s5622_s15 = smov [#allocation10]  }
  0x32   :  { %s52_s14 = sshll.u32 %s5621_s30, 4  ;;  %s75_s16 = sshll.u32 %s5622_s15, 4  ;;  %s53_s14 = int_to_ptr.vmem [resolvable:$true] %s52_s14  ;;  %s76_s16 = int_to_ptr.vmem [resolvable:$true] %s75_s16 }
  0x33   :  { %s5509_s17 = scalar_lea.vmem %s53_s14, 64  ;;  %p5514_p7 = scmp.lt.s32.totalorder %s53_s14, %s53_s14 }
  0x34   :  { %p5510_p6 = scmp.ne.s32.totalorder %s53_s14, %s5509_s17  ;;  %p5515_p8 = scmp.lt.s32.totalorder %s5509_s17, %s5509_s17 }
  0x36   :  { %p5516_p9 = por %p5515_p8, %p5514_p7 }
  0x38   :  { %p5517_p10 = pnand %p5516_p9, %p5510_p6 }
  0x3a   :  { %5520 = shalt.err (!%p5517_p10)
}
  0x3b   :  { %55 = dma.hbm_to_vmem [thread:$0]  %s5860_s2, 64, %s53_s14, [#allocation6]  }
  0x3c   :  { %s5529_s19 = scalar_lea.vmem %s76_s16, 8192  ;;  %p5534_p12 = scmp.lt.s32.totalorder %s76_s16, %s76_s16 }
  0x3d   :  { %p5530_p11 = scmp.ne.s32.totalorder %s76_s16, %s5529_s19  ;;  %p5535_p13 = scmp.lt.s32.totalorder %s5529_s19, %s5529_s19 }
  0x3f   :  { %p5536_p0 = por %p5535_p13, %p5534_p12 }
  0x41   :  { %p5537_p1 = pnand %p5536_p0, %p5530_p11 }
  0x43   :  { %5540 = shalt.err (!%p5537_p1)
}
  0x44   :  { %81 = dma.hbm_to_vmem [thread:$0]  %s5863_s5, 8192, %s76_s16, [#allocation9], %s5619_s24, %s5619_s24, %s5620_s25  }
  0x45   :  { %s5623_s21 = smov [#allocation13]  }
  0x46   :  { %s103_s22 = sshll.u32 %s5623_s21, 4  ;;  %s104_s22 = int_to_ptr.vmem [resolvable:$true] %s103_s22 }
  0x47   :  { %s5549_s23 = scalar_lea.vmem %s104_s22, 2048  ;;  %p5554_p3 = scmp.lt.s32.totalorder %s104_s22, %s104_s22 }
  0x48   :  { %p5550_p2 = scmp.ne.s32.totalorder %s104_s22, %s5549_s23  ;;  %p5555_p4 = scmp.lt.s32.totalorder %s5549_s23, %s5549_s23 }
  0x4a   :  { %p5556_p5 = por %p5555_p4, %p5554_p3 }
  0x4c   :  { %p5557_p6 = pnand %p5556_p5, %p5550_p2 }
  0x4e   :  { %5560 = shalt.err (!%p5557_p6)
}
  0x4f   :  { %s5624_s2 = smov 64   ;;  %s5625_s1 = smov 4  }
  0x50   :  { %109 = dma.hbm_to_vmem [thread:$0]  %s5867_s9, 2048, %s104_s22, [#allocation12], %s5624_s2, %s5624_s2, %s5625_s1  }
  0x51   :  { %s5626_s27 = smov [#allocation14]  }
  0x52   :  { %s117_s28 = sshll.u32 %s5626_s27, 4  ;;  %s118_s28 = int_to_ptr.vmem [resolvable:$true] %s117_s28 }
  0x53   :  { %s5569_s5 = scalar_lea.vmem %s118_s28, 1024  ;;  %p5574_p8 = scmp.lt.s32.totalorder %s118_s28, %s118_s28 }
  0x54   :  { %p5570_p7 = scmp.ne.s32.totalorder %s118_s28, %s5569_s5  ;;  %p5575_p9 = scmp.lt.s32.totalorder %s5569_s5, %s5569_s5 }
  0x56   :  { %p5576_p10 = por %p5575_p9, %p5574_p8 }
  0x58   :  { %p5577_p11 = pnand %p5576_p10, %p5570_p7 }
  0x5a   :  { %5580 = shalt.err (!%p5577_p11)
}
  0x5b   :  { %123 = dma.hbm_to_vmem [thread:$0]  %s5869_s11, 1024, %s118_s28, [#allocation15], %s5624_s2, %s5624_s2, %s5625_s1  }
  0x5c   :  { %5601 = dma.done.wait [#allocation3], 256  }
  0x5d   :  { %5602 = vsyncadd [#allocation3], 4294967040 }
  0x5e   :  { %5603 = dma.done.wait [#allocation6], 32832  }
  0x5f   :  { %5604 = vsyncadd [#allocation6], 4294934464 }
  0x60   :  { %5605 = dma.done.wait [#allocation9], 24576  }
  0x61   :  { %5606 = vsyncadd [#allocation9], 4294942720 }
  0x62   :  { %5607 = dma.done.wait [#allocation12], 6144  }
  0x63   :  { %5608 = vsyncadd [#allocation12], 4294961152 }
  0x64   :  { %5609 = dma.done.wait [#allocation15], 1024  }
  0x65   :  { %5610 = vsyncadd [#allocation15], 4294966272  ;;  %v4675_v0 = vld [vmem:[#allocation5 + $0xe4] ss:$16 sps:$4 sm:$0xff]   ;;  %v4679_v2 = vld [vmem:[#allocation5 + $0xe0] ss:$16 sps:$4 sm:$0xff]   ;;  %v159_v38 = vlaneseq }
  0x66   :  { %v4677_v1 = vld [vmem:[#allocation5 + $0x2e4] ss:$16 sps:$4 sm:$0xff]   ;;  %1763 = vmatprep.subr.bf16.mxu0 %v4675_v0  ;;  %v4680_v3 = vld [vmem:[#allocation5 + $0x2e0] ss:$16 sps:$4 sm:$0xff]   ;;  %v5627_v36 = vmov 1983009808  }
  0x67   :  { %1804 = vmatprep.subr.bf16.mxu1 %v4677_v1  ;;  %v4681_v4 = vld [vmem:[#allocation5 + $0xc4] ss:$16 sps:$4 sm:$0xff]   ;;  %1764 = vmatpush1.bf16.msra.mxu0 %v4679_v2  ;;  %v4685_v6 = vld [vmem:[#allocation5 + $0xc0] ss:$16 sps:$4 sm:$0xff]   ;;  %v157_v37 = vunpack.c.l.s4 %v5627_v36  ;;  %v5731_v43 = vshrl.u32 %v159_v38, 7  ;;  %vm5629_vm0 = vmmov 0  }
  0x68   :  { %1805 = vmatpush1.bf16.msra.mxu1 %v4680_v3  ;;  %v4683_v5 = vld [vmem:[#allocation5 + $0x2c4] ss:$16 sps:$4 sm:$0xff]   ;;  %1765 = vmatprep.subr.bf16.mxu0 %v4681_v4  ;;  %v4686_v7 = vld [vmem:[#allocation5 + $0x2c0] ss:$16 sps:$4 sm:$0xff]   ;;  %s5630_s17 = smov [#allocation16]  }
  0x69   :  { %1806 = vmatprep.subr.bf16.mxu1 %v4683_v5  ;;  %v4687_v8 = vld [vmem:[#allocation5 + $0xa4] ss:$16 sps:$4 sm:$0xff]   ;;  %v4691_v10 = vld [vmem:[#allocation5 + $0xa0] ss:$16 sps:$4 sm:$0xff]   ;;  %v158_v42 = vunpack.c.0.s8 %v157_v37  ;;  %s4087_s7 = sshll.u32 %s5630_s17, 4  ;;  %s4088_s7 = int_to_ptr.vmem [resolvable:$true] %s4087_s7 }
  0x6a   :  { %v4689_v9 = vld [vmem:[#allocation5 + $0x2a4] ss:$16 sps:$4 sm:$0xff]   ;;  %v4692_v11 = vld [vmem:[#allocation5 + $0x2a0] ss:$16 sps:$4 sm:$0xff]   ;;  %p5586_p13 = scmp.lt.s32.totalorder %s4088_s7, %s4088_s7 }
  0x6b   :  { %1766 = vmatpush1.bf16.msra.mxu0 %v4685_v6  ;;  %v4693_v12 = vld [vmem:[#allocation5 + $0x84] ss:$16 sps:$4 sm:$0xff]   ;;  %v4697_v14 = vld [vmem:[#allocation5 + $0x80] ss:$16 sps:$4 sm:$0xff]   ;;  %v5734_v49 = vsub.s32 %v158_v42, %v5731_v43  ;;  %v152_v42 = vld [vmem:[#allocation2 + $0x8] sm:$0xff] }
  0x6c   :  { %1807 = vmatpush1.bf16.msra.mxu1 %v4686_v7  ;;  %1767 = vmatprep.subr.bf16.mxu0 %v4687_v8  ;;  %v4695_v13 = vld [vmem:[#allocation5 + $0x284] ss:$16 sps:$4 sm:$0xff]   ;;  %v4698_v15 = vld [vmem:[#allocation5 + $0x280] ss:$16 sps:$4 sm:$0xff]  }
  0x6d   :  { %1808 = vmatprep.subr.bf16.mxu1 %v4689_v9  ;;  %v4699_v16 = vld [vmem:[#allocation5 + $0x64] ss:$16 sps:$4 sm:$0xff]   ;;  %v4703_v18 = vld [vmem:[#allocation5 + $0x60] ss:$16 sps:$4 sm:$0xff]  }
  0x6e   :  { %v4701_v17 = vld [vmem:[#allocation5 + $0x264] ss:$16 sps:$4 sm:$0xff]   ;;  %v4704_v19 = vld [vmem:[#allocation5 + $0x260] ss:$16 sps:$4 sm:$0xff]  }
  0x6f   :  { %1768 = vmatpush1.bf16.msra.mxu0 %v4691_v10  ;;  %v4705_v20 = vld [vmem:[#allocation5 + $0x44] ss:$16 sps:$4 sm:$0xff]   ;;  %v4709_v22 = vld [vmem:[#allocation5 + $0x40] ss:$16 sps:$4 sm:$0xff]  }
  0x70   :  { %1809 = vmatpush1.bf16.msra.mxu1 %v4692_v11  ;;  %1769 = vmatprep.subr.bf16.mxu0 %v4693_v12  ;;  %v4707_v21 = vld [vmem:[#allocation5 + $0x244] ss:$16 sps:$4 sm:$0xff]   ;;  %v4710_v23 = vld [vmem:[#allocation5 + $0x240] ss:$16 sps:$4 sm:$0xff]  }
  0x71   :  { %1810 = vmatprep.subr.bf16.mxu1 %v4695_v13  ;;  %v4711_v24 = vld [vmem:[#allocation5 + $0x24] ss:$16 sps:$4 sm:$0xff]   ;;  %v4715_v26 = vld [vmem:[#allocation5 + $0x20] ss:$16 sps:$4 sm:$0xff]  }
  0x72   :  { %v4713_v25 = vld [vmem:[#allocation5 + $0x224] ss:$16 sps:$4 sm:$0xff]   ;;  %v4716_v27 = vld [vmem:[#allocation5 + $0x220] ss:$16 sps:$4 sm:$0xff]  }
  0x73   :  { %1770 = vmatpush1.bf16.msra.mxu0 %v4697_v14  ;;  %v4717_v28 = vld [vmem:[#allocation5 + $0x4] ss:$16 sps:$4 sm:$0xff]   ;;  %v4721_v30 = vld [vmem:[#allocation5] ss:$16 sps:$4 sm:$0xff]  }
  0x74   :  { %1811 = vmatpush1.bf16.msra.mxu1 %v4698_v15  ;;  %1771 = vmatprep.subr.bf16.mxu0 %v4699_v16  ;;  %v4719_v29 = vld [vmem:[#allocation5 + $0x204] ss:$16 sps:$4 sm:$0xff]   ;;  %v4722_v31 = vld [vmem:[#allocation5 + $0x200] ss:$16 sps:$4 sm:$0xff]  }
  0x75   :  { %1812 = vmatprep.subr.bf16.mxu1 %v4701_v17  ;;  %v4723_v32 = vld [vmem:[#allocation5 + $0x1e4] ss:$16 sps:$4 sm:$0xff]   ;;  %v4727_v34 = vld [vmem:[#allocation5 + $0x1e0] ss:$16 sps:$4 sm:$0xff]  }
  0x76   :  { %v4725_v33 = vld [vmem:[#allocation5 + $0x3e4] ss:$16 sps:$4 sm:$0xff]   ;;  %v4728_v35 = vld [vmem:[#allocation5 + $0x3e0] ss:$16 sps:$4 sm:$0xff]  }
  0x77   :  { %1772 = vmatpush1.bf16.msra.mxu0 %v4703_v18  ;;  %v4729_v39 = vld [vmem:[#allocation5 + $0x1c4] ss:$16 sps:$4 sm:$0xff]   ;;  %v4733_v41 = vld [vmem:[#allocation5 + $0x1c0] ss:$16 sps:$4 sm:$0xff]  }
  0x78   :  { %1813 = vmatpush1.bf16.msra.mxu1 %v4704_v19  ;;  %1773 = vmatprep.subr.bf16.mxu0 %v4705_v20  ;;  %v4731_v40 = vld [vmem:[#allocation5 + $0x3c4] ss:$16 sps:$4 sm:$0xff]   ;;  %v4734_v44 = vld [vmem:[#allocation5 + $0x3c0] ss:$16 sps:$4 sm:$0xff]  }
  0x79   :  { %1814 = vmatprep.subr.bf16.mxu1 %v4707_v21  ;;  %v4735_v45 = vld [vmem:[#allocation5 + $0x1a4] ss:$16 sps:$4 sm:$0xff]   ;;  %v4739_v47 = vld [vmem:[#allocation5 + $0x1a0] ss:$16 sps:$4 sm:$0xff]  }
  0x7a   :  { %v4737_v46 = vld [vmem:[#allocation5 + $0x3a4] ss:$16 sps:$4 sm:$0xff]   ;;  %v4740_v48 = vld [vmem:[#allocation5 + $0x3a0] ss:$16 sps:$4 sm:$0xff]  }
  0x7b   :  { %1774 = vmatpush1.bf16.msra.mxu0 %v4709_v22  ;;  %v4741_v50 = vld [vmem:[#allocation5 + $0x184] ss:$16 sps:$4 sm:$0xff]   ;;  %v4745_v53 = vld [vmem:[#allocation5 + $0x180] ss:$16 sps:$4 sm:$0xff]  }
  0x7c   :  { %1815 = vmatpush1.bf16.msra.mxu1 %v4710_v23  ;;  %1775 = vmatprep.subr.bf16.mxu0 %v4711_v24  ;;  %v4743_v51 = vld [vmem:[#allocation5 + $0x384] ss:$16 sps:$4 sm:$0xff]   ;;  %v4746_v56 = vld [vmem:[#allocation5 + $0x380] ss:$16 sps:$4 sm:$0xff]  }
  0x7d   :  { %1816 = vmatprep.subr.bf16.mxu1 %v4713_v25  ;;  %v151_v52 = vld [vmem:[#allocation2] sm:$0xff] }
  0x7e   :  { %v162_v54 = vrot.slane %v151_v52, %v5734_v49  ;;  %v155_v55 = vcombine.high %v151_v52, %v151_v52  ;;  %v4747_v57 = vld [vmem:[#allocation5 + $0x164] ss:$16 sps:$4 sm:$0xff]   ;;  %v4751_v61 = vld [vmem:[#allocation5 + $0x160] ss:$16 sps:$4 sm:$0xff]  }
  0x7f   :  { %1776 = vmatpush1.bf16.msra.mxu0 %v4715_v26  ;;  %v4749_v58 = vld [vmem:[#allocation5 + $0x364] ss:$16 sps:$4 sm:$0xff]   ;;  %v4752_v0 = vld [vmem:[#allocation5 + $0x360] ss:$16 sps:$4 sm:$0xff]  }
  0x80   :  { %1817 = vmatpush1.bf16.msra.mxu1 %v4716_v27  ;;  %1777 = vmatprep.subr.bf16.mxu0 %v4717_v28  ;;  %v170_v59 = vcombine.high %v162_v54, %v162_v54  ;;  %v169_v60 = vrot.slane %v155_v55, %v5734_v49  ;;  %v4753_v1 = vld [vmem:[#allocation5 + $0x144] ss:$16 sps:$4 sm:$0xff]   ;;  %v4757_v4 = vld [vmem:[#allocation5 + $0x140] ss:$16 sps:$4 sm:$0xff]   ;;  %v5744_v16 = vpack.c.bf16 %v162_v54, %v162_v54 }
  0x81   :  { %1818 = vmatprep.subr.bf16.mxu1 %v4719_v29  ;;  %v4755_v2 = vld [vmem:[#allocation5 + $0x344] ss:$16 sps:$4 sm:$0xff]   ;;  %v4758_v5 = vld [vmem:[#allocation5 + $0x340] ss:$16 sps:$4 sm:$0xff]  }
  0x82   :  { %v5738_v62 = vpack.c.bf16 %v170_v59, %v170_v59  ;;  %v171_v63 = vcombine.high %v169_v60, %v169_v60  ;;  %v4759_v6 = vld [vmem:[#allocation5 + $0x124] ss:$16 sps:$4 sm:$0xff]   ;;  %v4763_v8 = vld [vmem:[#allocation5 + $0x120] ss:$16 sps:$4 sm:$0xff]   ;;  %v5746_v17 = vpack.c.bf16 %v169_v60, %v169_v60 }
  0x83   :  { %1778 = vmatpush1.bf16.msra.mxu0 %v4721_v30  ;;  %v4761_v7 = vld [vmem:[#allocation5 + $0x324] ss:$16 sps:$4 sm:$0xff]   ;;  %v4764_v9 = vld [vmem:[#allocation5 + $0x320] ss:$16 sps:$4 sm:$0xff]  }
  0x84   :  { %1819 = vmatpush1.bf16.msra.mxu1 %v4722_v31  ;;  %1779 = vmatprep.subr.bf16.mxu0 %v4723_v32  ;;  %v5740_v3 = vpack.c.bf16 %v171_v63, %v171_v63  ;;  %v4765_v10 = vld [vmem:[#allocation5 + $0x104] ss:$16 sps:$4 sm:$0xff]   ;;  %v4769_v12 = vld [vmem:[#allocation5 + $0x100] ss:$16 sps:$4 sm:$0xff]  }
  0x85   :  { %1820 = vmatprep.subr.bf16.mxu1 %v4725_v33  ;;  %1795 = vmatprep.mubr.bf16.mxu0 %v5738_v62  ;;  %v4767_v11 = vld [vmem:[#allocation5 + $0x304] ss:$16 sps:$4 sm:$0xff]   ;;  %v4770_v13 = vld [vmem:[#allocation5 + $0x300] ss:$16 sps:$4 sm:$0xff]  }
  0x86   :  { %1836 = vmatprep.mubr.bf16.mxu1 %v5740_v3  ;;  %v4774_v14 = vld [vmem:[#allocation5 + $0x4e4] ss:$16 sps:$4 sm:$0xff]   ;;  %v4772_v18 = vld [vmem:[#allocation5 + $0x4e0] ss:$16 sps:$4 sm:$0xff]  }
  0x87   :  { %1780 = vmatpush2.bf16.msra.mxu0 %v4727_v34  ;;  %v4777_v15 = vld [vmem:[#allocation5 + $0x6e4] ss:$16 sps:$4 sm:$0xff]   ;;  %v4775_v19 = vld [vmem:[#allocation5 + $0x6e0] ss:$16 sps:$4 sm:$0xff]  }
  0x88   :  { %1821 = vmatpush2.bf16.msra.mxu1 %v4728_v35  ;;  %1781 = vmatprep.subr.bf16.mxu0 %v4729_v39  ;;  %v4780_v20 = vld [vmem:[#allocation5 + $0x4c4] ss:$16 sps:$4 sm:$0xff]   ;;  %v4778_v22 = vld [vmem:[#allocation5 + $0x4c0] ss:$16 sps:$4 sm:$0xff]  }
  0x89   :  { %1822 = vmatprep.subr.bf16.mxu1 %v4731_v40  ;;  %v4783_v21 = vld [vmem:[#allocation5 + $0x6c4] ss:$16 sps:$4 sm:$0xff]   ;;  %v4781_v23 = vld [vmem:[#allocation5 + $0x6c0] ss:$16 sps:$4 sm:$0xff]  }
  0x8a   :  { %v4786_v24 = vld [vmem:[#allocation5 + $0x4a4] ss:$16 sps:$4 sm:$0xff]   ;;  %v4784_v26 = vld [vmem:[#allocation5 + $0x4a0] ss:$16 sps:$4 sm:$0xff]  }
  0x8b   :  { %1782 = vmatpush2.bf16.msra.mxu0 %v4733_v41  ;;  %v4789_v25 = vld [vmem:[#allocation5 + $0x6a4] ss:$16 sps:$4 sm:$0xff]   ;;  %v4787_v27 = vld [vmem:[#allocation5 + $0x6a0] ss:$16 sps:$4 sm:$0xff]  }
  0x8c   :  { %1823 = vmatpush2.bf16.msra.mxu1 %v4734_v44  ;;  %1783 = vmatprep.subr.bf16.mxu0 %v4735_v45  ;;  %v4792_v28 = vld [vmem:[#allocation5 + $0x484] ss:$16 sps:$4 sm:$0xff]   ;;  %v4790_v30 = vld [vmem:[#allocation5 + $0x480] ss:$16 sps:$4 sm:$0xff]   ;;  %v5751_v44 = vrot.slane %v152_v42, %v5734_v49  ;;  %v172_v45 = vcombine.high %v152_v42, %v152_v42  ;;  %v4884_v42 = vld [vmem:[#allocation5 + $0x2a8] ss:$16 sps:$4 sm:$0xff]  }
  0x8d   :  { %1824 = vmatprep.subr.bf16.mxu1 %v4737_v46  ;;  %v4795_v29 = vld [vmem:[#allocation5 + $0x684] ss:$16 sps:$4 sm:$0xff]   ;;  %v4793_v31 = vld [vmem:[#allocation5 + $0x680] ss:$16 sps:$4 sm:$0xff]  }
  0x8e   :  { %v4798_v32 = vld [vmem:[#allocation5 + $0x464] ss:$16 sps:$4 sm:$0xff]   ;;  %v4796_v34 = vld [vmem:[#allocation5 + $0x460] ss:$16 sps:$4 sm:$0xff]  }
  0x8f   :  { %1784 = vmatpush2.bf16.msra.mxu0 %v4739_v47  ;;  %v4801_v33 = vld [vmem:[#allocation5 + $0x664] ss:$16 sps:$4 sm:$0xff]   ;;  %v4799_v35 = vld [vmem:[#allocation5 + $0x660] ss:$16 sps:$4 sm:$0xff]  }
  0x90   :  { %1825 = vmatpush2.bf16.msra.mxu1 %v4740_v48  ;;  %1785 = vmatprep.subr.bf16.mxu0 %v4741_v50  ;;  %v4804_v36 = vld [vmem:[#allocation5 + $0x444] ss:$16 sps:$4 sm:$0xff]   ;;  %v4802_v38 = vld [vmem:[#allocation5 + $0x440] ss:$16 sps:$4 sm:$0xff]   ;;  %v187_v48 = vcombine.high %v5751_v44, %v5751_v44  ;;  %v5756_v50 = vrot.slane %v172_v45, %v5734_v49  ;;  %v4892_v45 = vld [vmem:[#allocation5 + $0x28c] ss:$16 sps:$4 sm:$0xff]  }
  0x91   :  { %1826 = vmatprep.subr.bf16.mxu1 %v4743_v51  ;;  %v4807_v37 = vld [vmem:[#allocation5 + $0x644] ss:$16 sps:$4 sm:$0xff]   ;;  %v4805_v39 = vld [vmem:[#allocation5 + $0x640] ss:$16 sps:$4 sm:$0xff]  }
  0x92   :  { %v4810_v40 = vld [vmem:[#allocation5 + $0x424] ss:$16 sps:$4 sm:$0xff]   ;;  %v4808_v46 = vld [vmem:[#allocation5 + $0x420] ss:$16 sps:$4 sm:$0xff]   ;;  %v188_v54 = vcombine.high %v5756_v50, %v5756_v50 }
  0x93   :  { %1786 = vmatpush2.bf16.msra.mxu0 %v4745_v53  ;;  %v4813_v41 = vld [vmem:[#allocation5 + $0x624] ss:$16 sps:$4 sm:$0xff]   ;;  %v4811_v47 = vld [vmem:[#allocation5 + $0x620] ss:$16 sps:$4 sm:$0xff]   ;;  %v5758_v53 = vpack.c.bf16 %v187_v48, %v187_v48  ;;  %v4895_v48 = vld [vmem:[#allocation5 + $0x6c] ss:$16 sps:$4 sm:$0xff]  }
  0x94   :  { %1827 = vmatpush2.bf16.msra.mxu1 %v4746_v56  ;;  %1787 = vmatprep.subr.bf16.mxu0 %v4747_v57  ;;  %v4816_v51 = vld [vmem:[#allocation5 + $0x404] ss:$16 sps:$4 sm:$0xff]   ;;  %v4814_v55 = vld [vmem:[#allocation5 + $0x400] ss:$16 sps:$4 sm:$0xff]   ;;  %v5762_v57 = vpack.c.bf16 %v188_v54, %v188_v54  ;;  %v4899_v54 = vld [vmem:[#allocation5 + $0x48] ss:$16 sps:$4 sm:$0xff]  }
  0x95   :  { %1828 = vmatprep.subr.bf16.mxu1 %v4749_v58  ;;  %v4819_v52 = vld [vmem:[#allocation5 + $0x604] ss:$16 sps:$4 sm:$0xff]   ;;  %v4817_v56 = vld [vmem:[#allocation5 + $0x600] ss:$16 sps:$4 sm:$0xff]  }
  0x96   :  { %v4822_v58 = vld [vmem:[#allocation5 + $0x5e4] ss:$16 sps:$4 sm:$0xff]   ;;  %v4820_v59 = vld [vmem:[#allocation5 + $0x5e0] ss:$16 sps:$4 sm:$0xff]  }
  0x97   :  { %1788 = vmatpush2.bf16.msra.mxu0 %v4751_v61  ;;  %v4825_v49 = vld [vmem:[#allocation5 + $0x7e4] ss:$16 sps:$4 sm:$0xff]   ;;  %v4823_v60 = vld [vmem:[#allocation5 + $0x7e0] ss:$16 sps:$4 sm:$0xff]  }
  0x98   :  { %1829 = vmatpush2.bf16.msra.mxu1 %v4752_v0  ;;  %1789 = vmatprep.subr.bf16.mxu0 %v4753_v1  ;;  %v4828_v61 = vld [vmem:[#allocation5 + $0x5c4] ss:$16 sps:$4 sm:$0xff]   ;;  %v4826_v0 = vld [vmem:[#allocation5 + $0x5c0] ss:$16 sps:$4 sm:$0xff]  }
  0x99   :  { %1830 = vmatprep.subr.bf16.mxu1 %v4755_v2  ;;  %v4831_v63 = vld [vmem:[#allocation5 + $0x7c4] ss:$16 sps:$4 sm:$0xff]   ;;  %v4829_v1 = vld [vmem:[#allocation5 + $0x7c0] ss:$16 sps:$4 sm:$0xff]  }
  0x9a   :  { %v4834_v2 = vld [vmem:[#allocation5 + $0x5a4] ss:$16 sps:$4 sm:$0xff]  }
  0x9b   :  { %1790 = vmatpush2.bf16.msra.mxu0 %v4757_v4  ;;  %v4837_v4 = vld [vmem:[#allocation5 + $0x7a4] ss:$16 sps:$4 sm:$0xff]  }
  0x9c   :  { %1831 = vmatpush2.bf16.msra.mxu1 %v4758_v5  ;;  %1791 = vmatprep.subr.bf16.mxu0 %v4759_v6  ;;  %v4832_v5 = vld [vmem:[#allocation5 + $0x5a0] ss:$16 sps:$4 sm:$0xff]  }
  0x9d   :  { %1832 = vmatprep.subr.bf16.mxu1 %v4761_v7  ;;  %v4835_v6 = vld [vmem:[#allocation5 + $0x7a0] ss:$16 sps:$4 sm:$0xff]   ;;  %v4840_v7 = vld [vmem:[#allocation5 + $0x584] ss:$16 sps:$4 sm:$0xff]  }
  0x9f   :  { %1792 = vmatpush2.bf16.msra.mxu0 %v4763_v8  ;;  %v4843_v8 = vld [vmem:[#allocation5 + $0x784] ss:$16 sps:$4 sm:$0xff]  }
  0xa0   :  { %1833 = vmatpush2.bf16.msra.mxu1 %v4764_v9  ;;  %1793 = vmatprep.subr.bf16.mxu0 %v4765_v10  ;;  %v4838_v9 = vld [vmem:[#allocation5 + $0x580] ss:$16 sps:$4 sm:$0xff]  }
  0xa1   :  { %1834 = vmatprep.subr.bf16.mxu1 %v4767_v11  ;;  %v4841_v10 = vld [vmem:[#allocation5 + $0x780] ss:$16 sps:$4 sm:$0xff]   ;;  %v4846_v11 = vld [vmem:[#allocation5 + $0x564] ss:$16 sps:$4 sm:$0xff]  }
  0xa3   :  { %1794 = vmatpush2.bf16.msra.mxu0 %v4769_v12  ;;  %v4849_v12 = vld [vmem:[#allocation5 + $0x764] ss:$16 sps:$4 sm:$0xff]  }
  0xa4   :  { %1835 = vmatpush2.bf16.msra.mxu1 %v4770_v13  ;;  %1845 = vmatprep.subr.bf16.mxu0 %v4774_v14  ;;  %v4844_v13 = vld [vmem:[#allocation5 + $0x560] ss:$16 sps:$4 sm:$0xff]  }
  0xa5   :  { %1886 = vmatprep.subr.bf16.mxu1 %v4777_v15  ;;  %v4847_v14 = vld [vmem:[#allocation5 + $0x760] ss:$16 sps:$4 sm:$0xff]   ;;  %v4852_v15 = vld [vmem:[#allocation5 + $0x544] ss:$16 sps:$4 sm:$0xff]  }
  0xa6   :  { %1796 = vmatmul.mubr.bf16.vlgmr.msra.gmra.mxu0 %v5744_v16 }
  0xa7   :  { %1837 = vmatmul.mubr.bf16.vlgmr.msra.gmra.mxu1 %v5746_v17  ;;  %1846 = vmatpush1.bf16.msra.mxu0 %v4772_v18  ;;  %v4855_v18 = vld [vmem:[#allocation5 + $0x744] ss:$16 sps:$4 sm:$0xff]  }
  0xa8   :  { %1887 = vmatpush1.bf16.msra.mxu1 %v4775_v19  ;;  %1847 = vmatprep.subr.bf16.mxu0 %v4780_v20  ;;  %v4850_v19 = vld [vmem:[#allocation5 + $0x540] ss:$16 sps:$4 sm:$0xff]  }
  0xa9   :  { %1888 = vmatprep.subr.bf16.mxu1 %v4783_v21  ;;  %1877 = vmatprep.mubr.bf16.mxu0 %v5758_v53  ;;  %v4853_v20 = vld [vmem:[#allocation5 + $0x740] ss:$16 sps:$4 sm:$0xff]   ;;  %v4858_v21 = vld [vmem:[#allocation5 + $0x524] ss:$16 sps:$4 sm:$0xff]  }
  0xaa   :  { %1918 = vmatprep.mubr.bf16.mxu1 %v5762_v57 }
  0xab   :  { %1848 = vmatpush1.bf16.msra.mxu0 %v4778_v22  ;;  %v4861_v22 = vld [vmem:[#allocation5 + $0x724] ss:$16 sps:$4 sm:$0xff]  }
  0xac   :  { %1889 = vmatpush1.bf16.msra.mxu1 %v4781_v23  ;;  %1849 = vmatprep.subr.bf16.mxu0 %v4786_v24  ;;  %v4856_v23 = vld [vmem:[#allocation5 + $0x520] ss:$16 sps:$4 sm:$0xff]  }
  0xad   :  { %1890 = vmatprep.subr.bf16.mxu1 %v4789_v25  ;;  %v4859_v24 = vld [vmem:[#allocation5 + $0x720] ss:$16 sps:$4 sm:$0xff]   ;;  %v4864_v25 = vld [vmem:[#allocation5 + $0x504] ss:$16 sps:$4 sm:$0xff]  }
  0xaf   :  { %1850 = vmatpush1.bf16.msra.mxu0 %v4784_v26  ;;  %v4867_v26 = vld [vmem:[#allocation5 + $0x704] ss:$16 sps:$4 sm:$0xff]  }
  0xb0   :  { %1891 = vmatpush1.bf16.msra.mxu1 %v4787_v27  ;;  %1851 = vmatprep.subr.bf16.mxu0 %v4792_v28  ;;  %v4862_v27 = vld [vmem:[#allocation5 + $0x500] ss:$16 sps:$4 sm:$0xff]  }
  0xb1   :  { %1892 = vmatprep.subr.bf16.mxu1 %v4795_v29  ;;  %v4865_v28 = vld [vmem:[#allocation5 + $0x700] ss:$16 sps:$4 sm:$0xff]   ;;  %v4871_v29 = vld [vmem:[#allocation5 + $0xec] ss:$16 sps:$4 sm:$0xff]  }
  0xb3   :  { %1852 = vmatpush1.bf16.msra.mxu0 %v4790_v30  ;;  %v4874_v30 = vld [vmem:[#allocation5 + $0x2ec] ss:$16 sps:$4 sm:$0xff]  }
  0xb4   :  { %1893 = vmatpush1.bf16.msra.mxu1 %v4793_v31  ;;  %1853 = vmatprep.subr.bf16.mxu0 %v4798_v32  ;;  %v5768_v31 = vpack.c.bf16 %v5751_v44, %v5751_v44  ;;  %v5772_v32 = vpack.c.bf16 %v5756_v50, %v5756_v50  ;;  %v4889_v44 = vld [vmem:[#allocation5 + $0x8c] ss:$16 sps:$4 sm:$0xff]  }
  0xb5   :  { %1894 = vmatprep.subr.bf16.mxu1 %v4801_v33  ;;  %v4869_v33 = vld [vmem:[#allocation5 + $0xe8] ss:$16 sps:$4 sm:$0xff]   ;;  %v4898_v50 = vld [vmem:[#allocation5 + $0x26c] ss:$16 sps:$4 sm:$0xff]  }
  0xb7   :  { %1854 = vmatpush1.bf16.msra.mxu0 %v4796_v34  ;;  %v4872_v34 = vld [vmem:[#allocation5 + $0x2e8] ss:$16 sps:$4 sm:$0xff]  }
  0xb8   :  { %1895 = vmatpush1.bf16.msra.mxu1 %v4799_v35  ;;  %1855 = vmatprep.subr.bf16.mxu0 %v4804_v36  ;;  %v4877_v35 = vld [vmem:[#allocation5 + $0xcc] ss:$16 sps:$4 sm:$0xff]  }
  0xb9   :  { %1896 = vmatprep.subr.bf16.mxu1 %v4807_v37  ;;  %v4880_v36 = vld [vmem:[#allocation5 + $0x2cc] ss:$16 sps:$4 sm:$0xff]   ;;  %v4875_v37 = vld [vmem:[#allocation5 + $0xc8] ss:$16 sps:$4 sm:$0xff]  }
  0xbb   :  { %1856 = vmatpush1.bf16.msra.mxu0 %v4802_v38  ;;  %v4878_v38 = vld [vmem:[#allocation5 + $0x2c8] ss:$16 sps:$4 sm:$0xff]  }
  0xbc   :  { %1897 = vmatpush1.bf16.msra.mxu1 %v4805_v39  ;;  %1857 = vmatprep.subr.bf16.mxu0 %v4810_v40  ;;  %v4883_v39 = vld [vmem:[#allocation5 + $0xac] ss:$16 sps:$4 sm:$0xff]  }
  0xbd   :  { %1898 = vmatprep.subr.bf16.mxu1 %v4813_v41  ;;  %v4886_v40 = vld [vmem:[#allocation5 + $0x2ac] ss:$16 sps:$4 sm:$0xff]   ;;  %v4881_v41 = vld [vmem:[#allocation5 + $0xa8] ss:$16 sps:$4 sm:$0xff]  }
  0xbf   :  { %1858 = vmatpush1.bf16.msra.mxu0 %v4808_v46  ;;  %v4887_v46 = vld [vmem:[#allocation5 + $0x88] ss:$16 sps:$4 sm:$0xff]  }
  0xc0   :  { %1899 = vmatpush1.bf16.msra.mxu1 %v4811_v47  ;;  %1859 = vmatprep.subr.bf16.mxu0 %v4816_v51  ;;  %v4890_v47 = vld [vmem:[#allocation5 + $0x288] ss:$16 sps:$4 sm:$0xff]   ;;  %v4901_v51 = vld [vmem:[#allocation5 + $0x4c] ss:$16 sps:$4 sm:$0xff]  }
  0xc1   :  { %1900 = vmatprep.subr.bf16.mxu1 %v4819_v52  ;;  %v4904_v52 = vld [vmem:[#allocation5 + $0x24c] ss:$16 sps:$4 sm:$0xff]  }
  0xc3   :  { %1860 = vmatpush1.bf16.msra.mxu0 %v4814_v55  ;;  %v4902_v55 = vld [vmem:[#allocation5 + $0x248] ss:$16 sps:$4 sm:$0xff]  }
  0xc4   :  { %1901 = vmatpush1.bf16.msra.mxu1 %v4817_v56  ;;  %1861 = vmatprep.subr.bf16.mxu0 %v4822_v58  ;;  %v4907_v56 = vld [vmem:[#allocation5 + $0x2c] ss:$16 sps:$4 sm:$0xff]  }
  0xc5   :  { %1902 = vmatprep.subr.bf16.mxu1 %v4825_v49  ;;  %v4910_v58 = vld [vmem:[#allocation5 + $0x22c] ss:$16 sps:$4 sm:$0xff]   ;;  %v4905_v49 = vld [vmem:[#allocation5 + $0x28] ss:$16 sps:$4 sm:$0xff]  }
  0xc7   :  { %1862 = vmatpush2.bf16.msra.mxu0 %v4820_v59  ;;  %v4908_v59 = vld [vmem:[#allocation5 + $0x228] ss:$16 sps:$4 sm:$0xff]  }
  0xc8   :  { %1903 = vmatpush2.bf16.msra.mxu1 %v4823_v60  ;;  %1863 = vmatprep.subr.bf16.mxu0 %v4828_v61  ;;  %v4913_v60 = vld [vmem:[#allocation5 + $0xc] ss:$16 sps:$4 sm:$0xff]  }
  0xc9   :  { %1904 = vmatprep.subr.bf16.mxu1 %v4831_v63  ;;  %v4916_v61 = vld [vmem:[#allocation5 + $0x20c] ss:$16 sps:$4 sm:$0xff]   ;;  %v4911_v63 = vld [vmem:[#allocation5 + $0x8] ss:$16 sps:$4 sm:$0xff]  }
  0xcb   :  { %1864 = vmatpush2.bf16.msra.mxu0 %v4826_v0  ;;  %v4914_v0 = vld [vmem:[#allocation5 + $0x208] ss:$16 sps:$4 sm:$0xff]  }
  0xcc   :  { %1905 = vmatpush2.bf16.msra.mxu1 %v4829_v1  ;;  %1865 = vmatprep.subr.bf16.mxu0 %v4834_v2  ;;  %v4919_v1 = vld [vmem:[#allocation5 + $0x1ec] ss:$16 sps:$4 sm:$0xff]  }
  0xcd   :  { %1906 = vmatprep.subr.bf16.mxu1 %v4837_v4  ;;  %v4922_v2 = vld [vmem:[#allocation5 + $0x3ec] ss:$16 sps:$4 sm:$0xff]   ;;  %v4917_v4 = vld [vmem:[#allocation5 + $0x1e8] ss:$16 sps:$4 sm:$0xff]  }
  0xcf   :  { %1866 = vmatpush2.bf16.msra.mxu0 %v4832_v5  ;;  %v4920_v5 = vld [vmem:[#allocation5 + $0x3e8] ss:$16 sps:$4 sm:$0xff]  }
  0xd0   :  { %1907 = vmatpush2.bf16.msra.mxu1 %v4835_v6  ;;  %1867 = vmatprep.subr.bf16.mxu0 %v4840_v7  ;;  %v4925_v6 = vld [vmem:[#allocation5 + $0x1cc] ss:$16 sps:$4 sm:$0xff]  }
  0xd1   :  { %1908 = vmatprep.subr.bf16.mxu1 %v4843_v8  ;;  %v4928_v7 = vld [vmem:[#allocation5 + $0x3cc] ss:$16 sps:$4 sm:$0xff]   ;;  %v4923_v8 = vld [vmem:[#allocation5 + $0x1c8] ss:$16 sps:$4 sm:$0xff]  }
  0xd3   :  { %1868 = vmatpush2.bf16.msra.mxu0 %v4838_v9  ;;  %v4926_v9 = vld [vmem:[#allocation5 + $0x3c8] ss:$16 sps:$4 sm:$0xff]  }
  0xd4   :  { %1909 = vmatpush2.bf16.msra.mxu1 %v4841_v10  ;;  %1869 = vmatprep.subr.bf16.mxu0 %v4846_v11  ;;  %v4931_v10 = vld [vmem:[#allocation5 + $0x1ac] ss:$16 sps:$4 sm:$0xff]  }
  0xd5   :  { %1910 = vmatprep.subr.bf16.mxu1 %v4849_v12  ;;  %v4934_v11 = vld [vmem:[#allocation5 + $0x3ac] ss:$16 sps:$4 sm:$0xff]   ;;  %v4929_v12 = vld [vmem:[#allocation5 + $0x1a8] ss:$16 sps:$4 sm:$0xff]  }
  0xd7   :  { %1870 = vmatpush2.bf16.msra.mxu0 %v4844_v13  ;;  %v4932_v13 = vld [vmem:[#allocation5 + $0x3a8] ss:$16 sps:$4 sm:$0xff]  }
  0xd8   :  { %1911 = vmatpush2.bf16.msra.mxu1 %v4847_v14  ;;  %1871 = vmatprep.subr.bf16.mxu0 %v4852_v15  ;;  %v4937_v14 = vld [vmem:[#allocation5 + $0x18c] ss:$16 sps:$4 sm:$0xff]  }
  0xd9   :  { %1912 = vmatprep.subr.bf16.mxu1 %v4855_v18  ;;  %v4940_v15 = vld [vmem:[#allocation5 + $0x38c] ss:$16 sps:$4 sm:$0xff]   ;;  %v4935_v18 = vld [vmem:[#allocation5 + $0x188] ss:$16 sps:$4 sm:$0xff]  }
  0xdb   :  { %1872 = vmatpush2.bf16.msra.mxu0 %v4850_v19  ;;  %v4938_v19 = vld [vmem:[#allocation5 + $0x388] ss:$16 sps:$4 sm:$0xff]  }
  0xdc   :  { %1913 = vmatpush2.bf16.msra.mxu1 %v4853_v20  ;;  %1873 = vmatprep.subr.bf16.mxu0 %v4858_v21  ;;  %v4943_v20 = vld [vmem:[#allocation5 + $0x16c] ss:$16 sps:$4 sm:$0xff]  }
  0xdd   :  { %1914 = vmatprep.subr.bf16.mxu1 %v4861_v22  ;;  %v4946_v21 = vld [vmem:[#allocation5 + $0x36c] ss:$16 sps:$4 sm:$0xff]   ;;  %v4941_v22 = vld [vmem:[#allocation5 + $0x168] ss:$16 sps:$4 sm:$0xff]  }
  0xdf   :  { %1874 = vmatpush2.bf16.msra.mxu0 %v4856_v23  ;;  %v4944_v23 = vld [vmem:[#allocation5 + $0x368] ss:$16 sps:$4 sm:$0xff]  }
  0xe0   :  { %1915 = vmatpush2.bf16.msra.mxu1 %v4859_v24  ;;  %1875 = vmatprep.subr.bf16.mxu0 %v4864_v25  ;;  %v4949_v24 = vld [vmem:[#allocation5 + $0x14c] ss:$16 sps:$4 sm:$0xff]  }
  0xe1   :  { %1916 = vmatprep.subr.bf16.mxu1 %v4867_v26  ;;  %v4952_v25 = vld [vmem:[#allocation5 + $0x34c] ss:$16 sps:$4 sm:$0xff]   ;;  %v4947_v26 = vld [vmem:[#allocation5 + $0x148] ss:$16 sps:$4 sm:$0xff]  }
  0xe3   :  { %1876 = vmatpush2.bf16.msra.mxu0 %v4862_v27  ;;  %v4950_v27 = vld [vmem:[#allocation5 + $0x348] ss:$16 sps:$4 sm:$0xff]  }
  0xe4   :  { %1917 = vmatpush2.bf16.msra.mxu1 %v4865_v28  ;;  %1927 = vmatprep.subr.bf16.mxu0 %v4871_v29  ;;  %v4955_v28 = vld [vmem:[#allocation5 + $0x12c] ss:$16 sps:$4 sm:$0xff]  }
  0xe5   :  { %1968 = vmatprep.subr.bf16.mxu1 %v4874_v30  ;;  %v4958_v29 = vld [vmem:[#allocation5 + $0x32c] ss:$16 sps:$4 sm:$0xff]   ;;  %v4953_v30 = vld [vmem:[#allocation5 + $0x128] ss:$16 sps:$4 sm:$0xff]  }
  0xe6   :  { %1878 = vmatmul.mubr.bf16.vlgmr.msra.gmra.mxu0 %v5768_v31 }
  0xe7   :  { %1919 = vmatmul.mubr.bf16.vlgmr.msra.gmra.mxu1 %v5772_v32  ;;  %1928 = vmatpush1.bf16.msra.mxu0 %v4869_v33  ;;  %v4956_v33 = vld [vmem:[#allocation5 + $0x328] ss:$16 sps:$4 sm:$0xff]  }
  0xe8   :  { %1969 = vmatpush1.bf16.msra.mxu1 %v4872_v34  ;;  %1929 = vmatprep.subr.bf16.mxu0 %v4877_v35  ;;  %v4961_v34 = vld [vmem:[#allocation5 + $0x10c] ss:$16 sps:$4 sm:$0xff]  }
  0xe9   :  { %1970 = vmatprep.subr.bf16.mxu1 %v4880_v36  ;;  %1959 = vmatprep.mubr.bf16.mxu0 %v5738_v62  ;;  %v4893_v62 = vld [vmem:[#allocation5 + $0x68] ss:$16 sps:$4 sm:$0xff]   ;;  %v4964_v35 = vld [vmem:[#allocation5 + $0x30c] ss:$16 sps:$4 sm:$0xff]  }
  0xea   :  { %2000 = vmatprep.mubr.bf16.mxu1 %v5740_v3  ;;  %v4896_v3 = vld [vmem:[#allocation5 + $0x268] ss:$16 sps:$4 sm:$0xff]  }
  0xeb   :  { %1930 = vmatpush1.bf16.msra.mxu0 %v4875_v37  ;;  %v4959_v36 = vld [vmem:[#allocation5 + $0x108] ss:$16 sps:$4 sm:$0xff]  }
  0xec   :  { %1971 = vmatpush1.bf16.msra.mxu1 %v4878_v38  ;;  %1931 = vmatprep.subr.bf16.mxu0 %v4883_v39  ;;  %v4962_v37 = vld [vmem:[#allocation5 + $0x308] ss:$16 sps:$4 sm:$0xff]   ;;  %v4967_v38 = vld [vmem:[#allocation5 + $0x4ec] ss:$16 sps:$4 sm:$0xff]  }
  0xed   :  { %1972 = vmatprep.subr.bf16.mxu1 %v4886_v40  ;;  %v4970_v39 = vld [vmem:[#allocation5 + $0x6ec] ss:$16 sps:$4 sm:$0xff]   ;;  %v4965_v40 = vld [vmem:[#allocation5 + $0x4e8] ss:$16 sps:$4 sm:$0xff]  }
  0xef   :  { %1932 = vmatpush1.bf16.msra.mxu0 %v4881_v41  ;;  %v4968_v41 = vld [vmem:[#allocation5 + $0x6e8] ss:$16 sps:$4 sm:$0xff]  }
  0xf0   :  { %1973 = vmatpush1.bf16.msra.mxu1 %v4884_v42  ;;  %1933 = vmatprep.subr.bf16.mxu0 %v4889_v44  ;;  %v4973_v42 = vld [vmem:[#allocation5 + $0x4cc] ss:$16 sps:$4 sm:$0xff]  }
  0xf1   :  { %1974 = vmatprep.subr.bf16.mxu1 %v4892_v45  ;;  %v4976_v44 = vld [vmem:[#allocation5 + $0x6cc] ss:$16 sps:$4 sm:$0xff]   ;;  %v4971_v45 = vld [vmem:[#allocation5 + $0x4c8] ss:$16 sps:$4 sm:$0xff]  }
  0xf3   :  { %1934 = vmatpush1.bf16.msra.mxu0 %v4887_v46  ;;  %v4974_v46 = vld [vmem:[#allocation5 + $0x6c8] ss:$16 sps:$4 sm:$0xff]  }
  0xf4   :  { %1975 = vmatpush1.bf16.msra.mxu1 %v4890_v47  ;;  %1935 = vmatprep.subr.bf16.mxu0 %v4895_v48  ;;  %v4979_v47 = vld [vmem:[#allocation5 + $0x4ac] ss:$16 sps:$4 sm:$0xff]  }
  0xf5   :  { %1976 = vmatprep.subr.bf16.mxu1 %v4898_v50  ;;  %v4982_v48 = vld [vmem:[#allocation5 + $0x6ac] ss:$16 sps:$4 sm:$0xff]   ;;  %v4977_v50 = vld [vmem:[#allocation5 + $0x4a8] ss:$16 sps:$4 sm:$0xff]  }
  0xf7   :  { %1936 = vmatpush1.bf16.msra.mxu0 %v4893_v62  ;;  %v4980_v62 = vld [vmem:[#allocation5 + $0x6a8] ss:$16 sps:$4 sm:$0xff]  }
  0xf8   :  { %1977 = vmatpush1.bf16.msra.mxu1 %v4896_v3  ;;  %1937 = vmatprep.subr.bf16.mxu0 %v4901_v51  ;;  %v4985_v3 = vld [vmem:[#allocation5 + $0x48c] ss:$16 sps:$4 sm:$0xff]   ;;  %v4983_v51 = vld [vmem:[#allocation5 + $0x488] ss:$16 sps:$4 sm:$0xff]  }
  0xf9   :  { %1978 = vmatprep.subr.bf16.mxu1 %v4904_v52  ;;  %v4991_v52 = vld [vmem:[#allocation5 + $0x46c] ss:$16 sps:$4 sm:$0xff]  }
  0xfb   :  { %1938 = vmatpush1.bf16.msra.mxu0 %v4899_v54  ;;  %v4994_v54 = vld [vmem:[#allocation5 + $0x66c] ss:$16 sps:$4 sm:$0xff]  }
  0xfc   :  { %1979 = vmatpush1.bf16.msra.mxu1 %v4902_v55  ;;  %1939 = vmatprep.subr.bf16.mxu0 %v4907_v56  ;;  %v4989_v55 = vld [vmem:[#allocation5 + $0x468] ss:$16 sps:$4 sm:$0xff]  }
  0xfd   :  { %1980 = vmatprep.subr.bf16.mxu1 %v4910_v58  ;;  %v4992_v56 = vld [vmem:[#allocation5 + $0x668] ss:$16 sps:$4 sm:$0xff]  }
  0xfe   :  { %v4995_v58 = vld [vmem:[#allocation5 + $0x448] ss:$16 sps:$4 sm:$0xff]  }
  0xff   :  { %1940 = vmatpush1.bf16.msra.mxu0 %v4905_v49  ;;  %v4998_v49 = vld [vmem:[#allocation5 + $0x648] ss:$16 sps:$4 sm:$0xff]  }
 0x100   :  { %1981 = vmatpush1.bf16.msra.mxu1 %v4908_v59  ;;  %1941 = vmatprep.subr.bf16.mxu0 %v4913_v60  ;;  %v5003_v59 = vld [vmem:[#allocation5 + $0x42c] ss:$16 sps:$4 sm:$0xff]  }
 0x101   :  { %1982 = vmatprep.subr.bf16.mxu1 %v4916_v61  ;;  %v5006_v60 = vld [vmem:[#allocation5 + $0x62c] ss:$16 sps:$4 sm:$0xff]   ;;  %v5001_v61 = vld [vmem:[#allocation5 + $0x428] ss:$16 sps:$4 sm:$0xff]  }
 0x103   :  { %1942 = vmatpush1.bf16.msra.mxu0 %v4911_v63  ;;  %v5004_v63 = vld [vmem:[#allocation5 + $0x628] ss:$16 sps:$4 sm:$0xff]  }
 0x104   :  { %1983 = vmatpush1.bf16.msra.mxu1 %v4914_v0  ;;  %1943 = vmatprep.subr.bf16.mxu0 %v4919_v1  ;;  %v5009_v0 = vld [vmem:[#allocation5 + $0x40c] ss:$16 sps:$4 sm:$0xff]  }
 0x105   :  { %1984 = vmatprep.subr.bf16.mxu1 %v4922_v2  ;;  %v5012_v1 = vld [vmem:[#allocation5 + $0x60c] ss:$16 sps:$4 sm:$0xff]   ;;  %v5007_v2 = vld [vmem:[#allocation5 + $0x408] ss:$16 sps:$4 sm:$0xff]  }
 0x107   :  { %1944 = vmatpush2.bf16.msra.mxu0 %v4917_v4  ;;  %v5010_v4 = vld [vmem:[#allocation5 + $0x608] ss:$16 sps:$4 sm:$0xff]  }
 0x108   :  { %1985 = vmatpush2.bf16.msra.mxu1 %v4920_v5  ;;  %1945 = vmatprep.subr.bf16.mxu0 %v4925_v6  ;;  %v5015_v5 = vld [vmem:[#allocation5 + $0x5ec] ss:$16 sps:$4 sm:$0xff]  }
 0x109   :  { %1986 = vmatprep.subr.bf16.mxu1 %v4928_v7  ;;  %v5018_v6 = vld [vmem:[#allocation5 + $0x7ec] ss:$16 sps:$4 sm:$0xff]   ;;  %v5013_v7 = vld [vmem:[#allocation5 + $0x5e8] ss:$16 sps:$4 sm:$0xff]  }
 0x10b   :  { %1946 = vmatpush2.bf16.msra.mxu0 %v4923_v8  ;;  %v5016_v8 = vld [vmem:[#allocation5 + $0x7e8] ss:$16 sps:$4 sm:$0xff]  }
 0x10c   :  { %1987 = vmatpush2.bf16.msra.mxu1 %v4926_v9  ;;  %1947 = vmatprep.subr.bf16.mxu0 %v4931_v10  ;;  %v5021_v9 = vld [vmem:[#allocation5 + $0x5cc] ss:$16 sps:$4 sm:$0xff]  }
 0x10d   :  { %1988 = vmatprep.subr.bf16.mxu1 %v4934_v11  ;;  %v5024_v10 = vld [vmem:[#allocation5 + $0x7cc] ss:$16 sps:$4 sm:$0xff]   ;;  %v5019_v11 = vld [vmem:[#allocation5 + $0x5c8] ss:$16 sps:$4 sm:$0xff]  }
 0x10f   :  { %1948 = vmatpush2.bf16.msra.mxu0 %v4929_v12  ;;  %v5022_v12 = vld [vmem:[#allocation5 + $0x7c8] ss:$16 sps:$4 sm:$0xff]  }
 0x110   :  { %1989 = vmatpush2.bf16.msra.mxu1 %v4932_v13  ;;  %1949 = vmatprep.subr.bf16.mxu0 %v4937_v14  ;;  %v5027_v13 = vld [vmem:[#allocation5 + $0x5ac] ss:$16 sps:$4 sm:$0xff]  }
 0x111   :  { %1990 = vmatprep.subr.bf16.mxu1 %v4940_v15  ;;  %v5030_v14 = vld [vmem:[#allocation5 + $0x7ac] ss:$16 sps:$4 sm:$0xff]   ;;  %v5025_v15 = vld [vmem:[#allocation5 + $0x5a8] ss:$16 sps:$4 sm:$0xff]  }
 0x113   :  { %1950 = vmatpush2.bf16.msra.mxu0 %v4935_v18  ;;  %v5028_v18 = vld [vmem:[#allocation5 + $0x7a8] ss:$16 sps:$4 sm:$0xff]  }
 0x114   :  { %1991 = vmatpush2.bf16.msra.mxu1 %v4938_v19  ;;  %1951 = vmatprep.subr.bf16.mxu0 %v4943_v20  ;;  %v5033_v19 = vld [vmem:[#allocation5 + $0x58c] ss:$16 sps:$4 sm:$0xff]  }
 0x115   :  { %1992 = vmatprep.subr.bf16.mxu1 %v4946_v21  ;;  %v5036_v20 = vld [vmem:[#allocation5 + $0x78c] ss:$16 sps:$4 sm:$0xff]   ;;  %v5031_v21 = vld [vmem:[#allocation5 + $0x588] ss:$16 sps:$4 sm:$0xff]  }
 0x117   :  { %1952 = vmatpush2.bf16.msra.mxu0 %v4941_v22  ;;  %v5034_v22 = vld [vmem:[#allocation5 + $0x788] ss:$16 sps:$4 sm:$0xff]  }
 0x118   :  { %1993 = vmatpush2.bf16.msra.mxu1 %v4944_v23  ;;  %1953 = vmatprep.subr.bf16.mxu0 %v4949_v24  ;;  %v5039_v23 = vld [vmem:[#allocation5 + $0x56c] ss:$16 sps:$4 sm:$0xff]  }
 0x119   :  { %1994 = vmatprep.subr.bf16.mxu1 %v4952_v25  ;;  %v5042_v24 = vld [vmem:[#allocation5 + $0x76c] ss:$16 sps:$4 sm:$0xff]   ;;  %v5037_v25 = vld [vmem:[#allocation5 + $0x568] ss:$16 sps:$4 sm:$0xff]  }
 0x11b   :  { %1954 = vmatpush2.bf16.msra.mxu0 %v4947_v26  ;;  %v5040_v26 = vld [vmem:[#allocation5 + $0x768] ss:$16 sps:$4 sm:$0xff]  }
 0x11c   :  { %1995 = vmatpush2.bf16.msra.mxu1 %v4950_v27  ;;  %1955 = vmatprep.subr.bf16.mxu0 %v4955_v28  ;;  %v5045_v27 = vld [vmem:[#allocation5 + $0x54c] ss:$16 sps:$4 sm:$0xff]  }
 0x11d   :  { %1996 = vmatprep.subr.bf16.mxu1 %v4958_v29  ;;  %v5048_v28 = vld [vmem:[#allocation5 + $0x74c] ss:$16 sps:$4 sm:$0xff]   ;;  %v5043_v29 = vld [vmem:[#allocation5 + $0x548] ss:$16 sps:$4 sm:$0xff]  }
 0x11f   :  { %1956 = vmatpush2.bf16.msra.mxu0 %v4953_v30  ;;  %v5046_v30 = vld [vmem:[#allocation5 + $0x748] ss:$16 sps:$4 sm:$0xff]  }
 0x120   :  { %1997 = vmatpush2.bf16.msra.mxu1 %v4956_v33  ;;  %1957 = vmatprep.subr.bf16.mxu0 %v4961_v34  ;;  %v5051_v33 = vld [vmem:[#allocation5 + $0x52c] ss:$16 sps:$4 sm:$0xff]  }
 0x121   :  { %1998 = vmatprep.subr.bf16.mxu1 %v4964_v35  ;;  %v5054_v34 = vld [vmem:[#allocation5 + $0x72c] ss:$16 sps:$4 sm:$0xff]   ;;  %v5049_v35 = vld [vmem:[#allocation5 + $0x528] ss:$16 sps:$4 sm:$0xff]  }
 0x123   :  { %1958 = vmatpush2.bf16.msra.mxu0 %v4959_v36  ;;  %v5052_v36 = vld [vmem:[#allocation5 + $0x728] ss:$16 sps:$4 sm:$0xff]  }
 0x124   :  { %1999 = vmatpush2.bf16.msra.mxu1 %v4962_v37  ;;  %2009 = vmatprep.subr.bf16.mxu0 %v4967_v38  ;;  %v5057_v37 = vld [vmem:[#allocation5 + $0x50c] ss:$16 sps:$4 sm:$0xff]  }
 0x125   :  { %2050 = vmatprep.subr.bf16.mxu1 %v4970_v39  ;;  %v5060_v38 = vld [vmem:[#allocation5 + $0x70c] ss:$16 sps:$4 sm:$0xff]   ;;  %v5055_v39 = vld [vmem:[#allocation5 + $0x508] ss:$16 sps:$4 sm:$0xff]  }
 0x126   :  { %1960 = vmatmul.mubr.bf16.vlgmr.msra.gmra.mxu0 %v5744_v16  ;;  %v4988_v16 = vld [vmem:[#allocation5 + $0x68c] ss:$16 sps:$4 sm:$0xff]  }
 0x127   :  { %2001 = vmatmul.mubr.bf16.vlgmr.msra.gmra.mxu1 %v5746_v17  ;;  %2010 = vmatpush1.bf16.msra.mxu0 %v4965_v40  ;;  %v4986_v17 = vld [vmem:[#allocation5 + $0x688] ss:$16 sps:$4 sm:$0xff]  }
 0x128   :  { %2051 = vmatpush1.bf16.msra.mxu1 %v4968_v41  ;;  %2011 = vmatprep.subr.bf16.mxu0 %v4973_v42  ;;  %v5058_v40 = vld [vmem:[#allocation5 + $0x708] ss:$16 sps:$4 sm:$0xff]   ;;  %v5061_v42 = vld [vmem:[#allocation8 + $0xe0] ss:$16 sps:$4 sm:$0xff]  }
 0x129   :  { %2052 = vmatprep.subr.bf16.mxu1 %v4976_v44  ;;  %2041 = vmatprep.mubr.bf16.mxu0 %v5758_v53  ;;  %v4997_v53 = vld [vmem:[#allocation5 + $0x44c] ss:$16 sps:$4 sm:$0xff]   ;;  %v5063_v41 = vld [vmem:[#allocation8 + $0xe4] ss:$16 sps:$4 sm:$0xff]  }
 0x12a   :  { %2082 = vmatprep.mubr.bf16.mxu1 %v5762_v57  ;;  %v5000_v57 = vld [vmem:[#allocation5 + $0x64c] ss:$16 sps:$4 sm:$0xff]   ;;  %v5066_v44 = vld [vmem:[#allocation8 + $0xc4] ss:$16 sps:$4 sm:$0xff]  }
 0x12b   :  { %2012 = vmatpush1.bf16.msra.mxu0 %v4971_v45  ;;  %v5064_v45 = vld [vmem:[#allocation8 + $0xc0] ss:$16 sps:$4 sm:$0xff]  }
 0x12c   :  { %2053 = vmatpush1.bf16.msra.mxu1 %v4974_v46  ;;  %2013 = vmatprep.subr.bf16.mxu0 %v4979_v47 }
 0x12d   :  { %2054 = vmatprep.subr.bf16.mxu1 %v4982_v48 }
 0x12f   :  { %2014 = vmatpush1.bf16.msra.mxu0 %v4977_v50 }
 0x130   :  { %2055 = vmatpush1.bf16.msra.mxu1 %v4980_v62  ;;  %2015 = vmatprep.subr.bf16.mxu0 %v4985_v3  ;;  %v5069_v62 = vld [vmem:[#allocation8 + $0xa4] ss:$16 sps:$4 sm:$0xff]   ;;  %v5067_v3 = vld [vmem:[#allocation8 + $0xa0] ss:$16 sps:$4 sm:$0xff]  }
 0x131   :  { %2056 = vmatprep.subr.bf16.mxu1 %v4988_v16 }
 0x133   :  { %2016 = vmatpush1.bf16.msra.mxu0 %v4983_v51 }
 0x134   :  { %2057 = vmatpush1.bf16.msra.mxu1 %v4986_v17  ;;  %2017 = vmatprep.subr.bf16.mxu0 %v4991_v52 }
 0x135   :  { %2058 = vmatprep.subr.bf16.mxu1 %v4994_v54  ;;  %v5072_v54 = vld [vmem:[#allocation8 + $0x84] ss:$16 sps:$4 sm:$0xff]  }
 0x137   :  { %2018 = vmatpush1.bf16.msra.mxu0 %v4989_v55  ;;  %v5070_v55 = vld [vmem:[#allocation8 + $0x80] ss:$16 sps:$4 sm:$0xff]  }
 0x138   :  { %2059 = vmatpush1.bf16.msra.mxu1 %v4992_v56  ;;  %2019 = vmatprep.subr.bf16.mxu0 %v4997_v53  ;;  %v5075_v56 = vld [vmem:[#allocation8 + $0x64] ss:$16 sps:$4 sm:$0xff]   ;;  %v5160_v53 = vld [vmem:[#allocation8 + $0x2c0] ss:$16 sps:$4 sm:$0xff]  }
 0x139   :  { %2060 = vmatprep.subr.bf16.mxu1 %v5000_v57  ;;  %v5162_v57 = vld [vmem:[#allocation8 + $0x2c4] ss:$16 sps:$4 sm:$0xff]  }
 0x13b   :  { %2020 = vmatpush1.bf16.msra.mxu0 %v4995_v58  ;;  %v5073_v58 = vld [vmem:[#allocation8 + $0x60] ss:$16 sps:$4 sm:$0xff]  }
 0x13c   :  { %2061 = vmatpush1.bf16.msra.mxu1 %v4998_v49  ;;  %2021 = vmatprep.subr.bf16.mxu0 %v5003_v59  ;;  %v5165_v49 = vld [vmem:[#allocation8 + $0x2a4] ss:$16 sps:$4 sm:$0xff]  }
 0x13d   :  { %2062 = vmatprep.subr.bf16.mxu1 %v5006_v60  ;;  %v5078_v59 = vld [vmem:[#allocation8 + $0x44] ss:$16 sps:$4 sm:$0xff]   ;;  %v5163_v60 = vld [vmem:[#allocation8 + $0x2a0] ss:$16 sps:$4 sm:$0xff]  }
 0x13f   :  { %2022 = vmatpush1.bf16.msra.mxu0 %v5001_v61  ;;  %v5076_v61 = vld [vmem:[#allocation8 + $0x40] ss:$16 sps:$4 sm:$0xff]  }
 0x140   :  { %2063 = vmatpush1.bf16.msra.mxu1 %v5004_v63  ;;  %2023 = vmatprep.subr.bf16.mxu0 %v5009_v0  ;;  %v5168_v63 = vld [vmem:[#allocation8 + $0x284] ss:$16 sps:$4 sm:$0xff]  }
 0x141   :  { %2064 = vmatprep.subr.bf16.mxu1 %v5012_v1  ;;  %v5081_v0 = vld [vmem:[#allocation8 + $0x24] ss:$16 sps:$4 sm:$0xff]   ;;  %v5079_v1 = vld [vmem:[#allocation8 + $0x20] ss:$16 sps:$4 sm:$0xff]  }
 0x143   :  { %2024 = vmatpush1.bf16.msra.mxu0 %v5007_v2  ;;  %v5084_v2 = vld [vmem:[#allocation8 + $0x4] ss:$16 sps:$4 sm:$0xff]  }
 0x144   :  { %2065 = vmatpush1.bf16.msra.mxu1 %v5010_v4  ;;  %2025 = vmatprep.subr.bf16.mxu0 %v5015_v5  ;;  %v5166_v4 = vld [vmem:[#allocation8 + $0x280] ss:$16 sps:$4 sm:$0xff]   ;;  %v5171_v5 = vld [vmem:[#allocation8 + $0x264] ss:$16 sps:$4 sm:$0xff]  }
 0x145   :  { %2066 = vmatprep.subr.bf16.mxu1 %v5018_v6  ;;  %v5169_v6 = vld [vmem:[#allocation8 + $0x260] ss:$16 sps:$4 sm:$0xff]  }
 0x147   :  { %2026 = vmatpush2.bf16.msra.mxu0 %v5013_v7  ;;  %v5082_v7 = vld [vmem:[#allocation8] ss:$16 sps:$4 sm:$0xff]  }
 0x148   :  { %2067 = vmatpush2.bf16.msra.mxu1 %v5016_v8  ;;  %2027 = vmatprep.subr.bf16.mxu0 %v5021_v9  ;;  %v5174_v8 = vld [vmem:[#allocation8 + $0x244] ss:$16 sps:$4 sm:$0xff]  }
 0x149   :  { %2068 = vmatprep.subr.bf16.mxu1 %v5024_v10  ;;  %v5087_v9 = vld [vmem:[#allocation8 + $0x1e4] ss:$16 sps:$4 sm:$0xff]   ;;  %v5172_v10 = vld [vmem:[#allocation8 + $0x240] ss:$16 sps:$4 sm:$0xff]  }
 0x14b   :  { %2028 = vmatpush2.bf16.msra.mxu0 %v5019_v11  ;;  %v5085_v11 = vld [vmem:[#allocation8 + $0x1e0] ss:$16 sps:$4 sm:$0xff]  }
 0x14c   :  { %2069 = vmatpush2.bf16.msra.mxu1 %v5022_v12  ;;  %2029 = vmatprep.subr.bf16.mxu0 %v5027_v13  ;;  %v5177_v12 = vld [vmem:[#allocation8 + $0x224] ss:$16 sps:$4 sm:$0xff]  }
 0x14d   :  { %2070 = vmatprep.subr.bf16.mxu1 %v5030_v14  ;;  %v5090_v13 = vld [vmem:[#allocation8 + $0x1c4] ss:$16 sps:$4 sm:$0xff]   ;;  %v5175_v14 = vld [vmem:[#allocation8 + $0x220] ss:$16 sps:$4 sm:$0xff]  }
 0x14f   :  { %2030 = vmatpush2.bf16.msra.mxu0 %v5025_v15  ;;  %v5088_v15 = vld [vmem:[#allocation8 + $0x1c0] ss:$16 sps:$4 sm:$0xff]  }
 0x150   :  { %2071 = vmatpush2.bf16.msra.mxu1 %v5028_v18  ;;  %2031 = vmatprep.subr.bf16.mxu0 %v5033_v19  ;;  %v5180_v18 = vld [vmem:[#allocation8 + $0x204] ss:$16 sps:$4 sm:$0xff]  }
 0x151   :  { %2072 = vmatprep.subr.bf16.mxu1 %v5036_v20  ;;  %v5093_v19 = vld [vmem:[#allocation8 + $0x1a4] ss:$16 sps:$4 sm:$0xff]   ;;  %v5178_v20 = vld [vmem:[#allocation8 + $0x200] ss:$16 sps:$4 sm:$0xff]  }
 0x153   :  { %2032 = vmatpush2.bf16.msra.mxu0 %v5031_v21  ;;  %v5091_v21 = vld [vmem:[#allocation8 + $0x1a0] ss:$16 sps:$4 sm:$0xff]  }
 0x154   :  { %2073 = vmatpush2.bf16.msra.mxu1 %v5034_v22  ;;  %2033 = vmatprep.subr.bf16.mxu0 %v5039_v23  ;;  %v5183_v22 = vld [vmem:[#allocation8 + $0x3e4] ss:$16 sps:$4 sm:$0xff]  }
 0x155   :  { %2074 = vmatprep.subr.bf16.mxu1 %v5042_v24  ;;  %v5096_v23 = vld [vmem:[#allocation8 + $0x184] ss:$16 sps:$4 sm:$0xff]   ;;  %v5181_v24 = vld [vmem:[#allocation8 + $0x3e0] ss:$16 sps:$4 sm:$0xff]  }
 0x157   :  { %2034 = vmatpush2.bf16.msra.mxu0 %v5037_v25  ;;  %v5094_v25 = vld [vmem:[#allocation8 + $0x180] ss:$16 sps:$4 sm:$0xff]  }
 0x158   :  { %2075 = vmatpush2.bf16.msra.mxu1 %v5040_v26  ;;  %2035 = vmatprep.subr.bf16.mxu0 %v5045_v27  ;;  %v5186_v26 = vld [vmem:[#allocation8 + $0x3c4] ss:$16 sps:$4 sm:$0xff]  }
 0x159   :  { %2076 = vmatprep.subr.bf16.mxu1 %v5048_v28  ;;  %v5099_v27 = vld [vmem:[#allocation8 + $0x164] ss:$16 sps:$4 sm:$0xff]   ;;  %v5184_v28 = vld [vmem:[#allocation8 + $0x3c0] ss:$16 sps:$4 sm:$0xff]  }
 0x15b   :  { %2036 = vmatpush2.bf16.msra.mxu0 %v5043_v29  ;;  %v5097_v29 = vld [vmem:[#allocation8 + $0x160] ss:$16 sps:$4 sm:$0xff]  }
 0x15c   :  { %2077 = vmatpush2.bf16.msra.mxu1 %v5046_v30  ;;  %2037 = vmatprep.subr.bf16.mxu0 %v5051_v33  ;;  %v5189_v30 = vld [vmem:[#allocation8 + $0x3a4] ss:$16 sps:$4 sm:$0xff]  }
 0x15d   :  { %2078 = vmatprep.subr.bf16.mxu1 %v5054_v34  ;;  %v5102_v33 = vld [vmem:[#allocation8 + $0x144] ss:$16 sps:$4 sm:$0xff]   ;;  %v5187_v34 = vld [vmem:[#allocation8 + $0x3a0] ss:$16 sps:$4 sm:$0xff]  }
 0x15f   :  { %2038 = vmatpush2.bf16.msra.mxu0 %v5049_v35  ;;  %v5100_v35 = vld [vmem:[#allocation8 + $0x140] ss:$16 sps:$4 sm:$0xff]  }
 0x160   :  { %2079 = vmatpush2.bf16.msra.mxu1 %v5052_v36  ;;  %2039 = vmatprep.subr.bf16.mxu0 %v5057_v37  ;;  %v5192_v36 = vld [vmem:[#allocation8 + $0x384] ss:$16 sps:$4 sm:$0xff]  }
 0x161   :  { %2080 = vmatprep.subr.bf16.mxu1 %v5060_v38  ;;  %v5105_v37 = vld [vmem:[#allocation8 + $0x124] ss:$16 sps:$4 sm:$0xff]   ;;  %v5793_v38 = vsub.s32 0, %v5731_v43 }
 0x163   :  { %2040 = vmatpush2.bf16.msra.mxu0 %v5055_v39  ;;  %v5795_v39 = vld [vmem:[#allocation7] sm:$0xf] }
 0x164   :  { %2081 = vmatpush2.bf16.msra.mxu1 %v5058_v40  ;;  %2889 = vmatprep.subr.bf16.mxu0 %v5063_v41  ;;  %v5190_v40 = vld [vmem:[#allocation8 + $0x380] ss:$16 sps:$4 sm:$0xff]   ;;  %v5798_v41 = vsub.s32 1, %v5731_v43 }
 0x166   :  { %v5782_v46 = vpop.f32.mrf.mxu0  ;;  %2042 = vmatmul.mubr.bf16.vlgmr.msra.gmra.mxu0 %v5768_v31  ;;  %v5157_v31 = vld [vmem:[#allocation8 + $0x2e0] ss:$16 sps:$4 sm:$0xff]  }
 0x167   :  { %v5784_v47 = vpop.f32.mrf.mxu1  ;;  %2083 = vmatmul.mubr.bf16.vlgmr.msra.gmra.mxu1 %v5772_v32  ;;  %2890 = vmatpush1.bf16.msra.mxu0 %v5061_v42  ;;  %v5159_v32 = vld [vmem:[#allocation8 + $0x2e4] ss:$16 sps:$4 sm:$0xff]   ;;  %v5103_v42 = vld [vmem:[#allocation8 + $0x120] ss:$16 sps:$4 sm:$0xff]  }
 0x168   :  { %v5788_v48 = vpop.f32.mrf.mxu0  ;;  %2891 = vmatprep.subr.bf16.mxu0 %v5066_v44  ;;  %2930 = vmatprep.subr.bf16.mxu1 %v5159_v32  ;;  %v5195_v44 = vld [vmem:[#allocation8 + $0x364] ss:$16 sps:$4 sm:$0xff]  }
 0x169   :  { %v5790_v50 = vpop.f32.mrf.mxu1  ;;  %2931 = vmatpush1.bf16.msra.mxu1 %v5157_v31 }
 0x16a   :  { %v1801_v16 = vpop.f32.mrf.mxu0  ;;  %2932 = vmatprep.subr.bf16.mxu1 %v5162_v57 }
 0x16b   :  { %v1842_v51 = vpop.f32.mrf.mxu1  ;;  %2892 = vmatpush1.bf16.msra.mxu0 %v5064_v45  ;;  %v5108_v45 = vld [vmem:[#allocation8 + $0x104] ss:$16 sps:$4 sm:$0xff]   ;;  %v470_v16 = vrot.slane %v5795_v39, %v5798_v41 }
 0x16c   :  { %v1802_v17 = vpop.f32.mrf.mxu0  ;;  %2893 = vmatprep.subr.bf16.mxu0 %v5069_v62  ;;  %v466_v62 = vrot.slane %v5795_v39, %v5793_v38  ;;  %v5106_v51 = vld [vmem:[#allocation8 + $0x100] ss:$16 sps:$4 sm:$0xff]  }
 0x16d   :  { %v1843_v52 = vpop.f32.mrf.mxu1  ;;  %2933 = vmatpush1.bf16.msra.mxu1 %v5160_v53  ;;  %v5198_v17 = vld [vmem:[#allocation8 + $0x344] ss:$16 sps:$4 sm:$0xff]  }
 0x16e   :  { %2934 = vmatprep.subr.bf16.mxu1 %v5165_v49  ;;  %v5111_v52 = vld [vmem:[#allocation8 + $0xec] ss:$16 sps:$4 sm:$0xff]  }
 0x16f   :  { %2894 = vmatpush1.bf16.msra.mxu0 %v5067_v3  ;;  %v5193_v3 = vld [vmem:[#allocation8 + $0x360] ss:$16 sps:$4 sm:$0xff]  }
 0x170   :  { %2895 = vmatprep.subr.bf16.mxu0 %v5072_v54  ;;  %v1798_v54 = vadd.f32 %v5782_v46, %v466_v62 }
 0x171   :  { %2935 = vmatpush1.bf16.msra.mxu1 %v5163_v60  ;;  %v5201_v60 = vld [vmem:[#allocation8 + $0x324] ss:$16 sps:$4 sm:$0xff]  }
 0x172   :  { %2936 = vmatprep.subr.bf16.mxu1 %v5168_v63  ;;  %v1839_v31 = vadd.f32 %v5784_v47, %v1798_v54  ;;  %v5199_v63 = vld [vmem:[#allocation8 + $0x320] ss:$16 sps:$4 sm:$0xff]  }
 0x173   :  { %2896 = vmatpush1.bf16.msra.mxu0 %v5070_v55  ;;  %v5196_v55 = vld [vmem:[#allocation8 + $0x340] ss:$16 sps:$4 sm:$0xff]  }
 0x174   :  { %2897 = vmatprep.subr.bf16.mxu0 %v5075_v56  ;;  %v1800_v56 = vadd.f32 %v5788_v48, %v470_v16  ;;  %v5151_v16 = vld [vmem:[#allocation8 + $0x128] ss:$16 sps:$4 sm:$0xff]  }
 0x175   :  { %2937 = vmatpush1.bf16.msra.mxu1 %v5166_v4 }
 0x176   :  { %2938 = vmatprep.subr.bf16.mxu1 %v5171_v5  ;;  %v1841_v57 = vadd.f32 %v5790_v50, %v1800_v56  ;;  %v5204_v5 = vld [vmem:[#allocation8 + $0x304] ss:$16 sps:$4 sm:$0xff]   ;;  %v5154_v56 = vld [vmem:[#allocation8 + $0x108] ss:$16 sps:$4 sm:$0xff]  }
 0x177   :  { %2898 = vmatpush1.bf16.msra.mxu0 %v5073_v58 }
 0x178   :  { %2899 = vmatprep.subr.bf16.mxu0 %v5078_v59 }
 0x179   :  { %2939 = vmatpush1.bf16.msra.mxu1 %v5169_v6 }
 0x17a   :  { %2940 = vmatprep.subr.bf16.mxu1 %v5174_v8  ;;  %v5109_v8 = vld [vmem:[#allocation8 + $0xe8] ss:$16 sps:$4 sm:$0xff]  }
 0x17b   :  { %2900 = vmatpush1.bf16.msra.mxu0 %v5076_v61 }
 0x17c   :  { %2901 = vmatprep.subr.bf16.mxu0 %v5081_v0 }
 0x17d   :  { %2941 = vmatpush1.bf16.msra.mxu1 %v5172_v10  ;;  %v5114_v10 = vld [vmem:[#allocation8 + $0xcc] ss:$16 sps:$4 sm:$0xff]  }
 0x17e   :  { %2942 = vmatprep.subr.bf16.mxu1 %v5177_v12  ;;  %v5112_v12 = vld [vmem:[#allocation8 + $0xc8] ss:$16 sps:$4 sm:$0xff]  }
 0x17f   :  { %2902 = vmatpush1.bf16.msra.mxu0 %v5079_v1 }
 0x180   :  { %2903 = vmatprep.subr.bf16.mxu0 %v5084_v2 }
 0x181   :  { %2943 = vmatpush1.bf16.msra.mxu1 %v5175_v14  ;;  %v5115_v14 = vld [vmem:[#allocation8 + $0xa8] ss:$16 sps:$4 sm:$0xff]  }
 0x182   :  { %2944 = vmatprep.subr.bf16.mxu1 %v5180_v18  ;;  %v5118_v18 = vld [vmem:[#allocation8 + $0x88] ss:$16 sps:$4 sm:$0xff]  }
 0x183   :  { %2904 = vmatpush1.bf16.msra.mxu0 %v5082_v7  ;;  %v5202_v7 = vld [vmem:[#allocation8 + $0x300] ss:$16 sps:$4 sm:$0xff]  }
 0x184   :  { %2905 = vmatprep.subr.bf16.mxu0 %v5087_v9 }
 0x185   :  { %2945 = vmatpush1.bf16.msra.mxu1 %v5178_v20  ;;  %v5121_v20 = vld [vmem:[#allocation8 + $0x68] ss:$16 sps:$4 sm:$0xff]  }
 0x186   :  { %2946 = vmatprep.subr.bf16.mxu1 %v5183_v22  ;;  %v5124_v22 = vld [vmem:[#allocation8 + $0x48] ss:$16 sps:$4 sm:$0xff]  }
 0x187   :  { %2906 = vmatpush2.bf16.msra.mxu0 %v5085_v11  ;;  %v5207_v11 = vld [vmem:[#allocation8 + $0x2ec] ss:$16 sps:$4 sm:$0xff]  }
 0x188   :  { %2907 = vmatprep.subr.bf16.mxu0 %v5090_v13  ;;  %v5117_v13 = vld [vmem:[#allocation8 + $0xac] ss:$16 sps:$4 sm:$0xff]  }
 0x189   :  { %2947 = vmatpush2.bf16.msra.mxu1 %v5181_v24  ;;  %v5127_v24 = vld [vmem:[#allocation8 + $0x28] ss:$16 sps:$4 sm:$0xff]  }
 0x18a   :  { %2948 = vmatprep.subr.bf16.mxu1 %v5186_v26  ;;  %v5130_v26 = vld [vmem:[#allocation8 + $0x8] ss:$16 sps:$4 sm:$0xff]  }
 0x18b   :  { %2908 = vmatpush2.bf16.msra.mxu0 %v5088_v15  ;;  %v5120_v15 = vld [vmem:[#allocation8 + $0x8c] ss:$16 sps:$4 sm:$0xff]  }
 0x18c   :  { %2909 = vmatprep.subr.bf16.mxu0 %v5093_v19  ;;  %v5123_v19 = vld [vmem:[#allocation8 + $0x6c] ss:$16 sps:$4 sm:$0xff]  }
 0x18d   :  { %2949 = vmatpush2.bf16.msra.mxu1 %v5184_v28  ;;  %v5133_v28 = vld [vmem:[#allocation8 + $0x1e8] ss:$16 sps:$4 sm:$0xff]  }
 0x18e   :  { %2950 = vmatprep.subr.bf16.mxu1 %v5189_v30  ;;  %v5136_v30 = vld [vmem:[#allocation8 + $0x1c8] ss:$16 sps:$4 sm:$0xff]  }
 0x18f   :  { %2910 = vmatpush2.bf16.msra.mxu0 %v5091_v21  ;;  %v5126_v21 = vld [vmem:[#allocation8 + $0x4c] ss:$16 sps:$4 sm:$0xff]  }
 0x190   :  { %2911 = vmatprep.subr.bf16.mxu0 %v5096_v23  ;;  %v5129_v23 = vld [vmem:[#allocation8 + $0x2c] ss:$16 sps:$4 sm:$0xff]  }
 0x191   :  { %2951 = vmatpush2.bf16.msra.mxu1 %v5187_v34  ;;  %v5139_v34 = vld [vmem:[#allocation8 + $0x1a8] ss:$16 sps:$4 sm:$0xff]  }
 0x192   :  { %2952 = vmatprep.subr.bf16.mxu1 %v5192_v36  ;;  %v5142_v36 = vld [vmem:[#allocation8 + $0x188] ss:$16 sps:$4 sm:$0xff]  }
 0x193   :  { %2912 = vmatpush2.bf16.msra.mxu0 %v5094_v25  ;;  %v5132_v25 = vld [vmem:[#allocation8 + $0xc] ss:$16 sps:$4 sm:$0xff]  }
 0x194   :  { %2913 = vmatprep.subr.bf16.mxu0 %v5099_v27  ;;  %v5135_v27 = vld [vmem:[#allocation8 + $0x1ec] ss:$16 sps:$4 sm:$0xff]  }
 0x195   :  { %2953 = vmatpush2.bf16.msra.mxu1 %v5190_v40  ;;  %v5145_v40 = vld [vmem:[#allocation8 + $0x168] ss:$16 sps:$4 sm:$0xff]  }
 0x196   :  { %2954 = vmatprep.subr.bf16.mxu1 %v5195_v44  ;;  %v5148_v44 = vld [vmem:[#allocation8 + $0x148] ss:$16 sps:$4 sm:$0xff]  }
 0x197   :  { %2914 = vmatpush2.bf16.msra.mxu0 %v5097_v29  ;;  %v5138_v29 = vld [vmem:[#allocation8 + $0x1cc] ss:$16 sps:$4 sm:$0xff]  }
 0x198   :  { %2915 = vmatprep.subr.bf16.mxu0 %v5102_v33  ;;  %v5141_v33 = vld [vmem:[#allocation8 + $0x1ac] ss:$16 sps:$4 sm:$0xff]  }
 0x199   :  { %2955 = vmatpush2.bf16.msra.mxu1 %v5193_v3 }
 0x19a   :  { %2956 = vmatprep.subr.bf16.mxu1 %v5198_v17 }
 0x19b   :  { %2916 = vmatpush2.bf16.msra.mxu0 %v5100_v35  ;;  %v5144_v35 = vld [vmem:[#allocation8 + $0x18c] ss:$16 sps:$4 sm:$0xff]  }
 0x19c   :  { %2917 = vmatprep.subr.bf16.mxu0 %v5105_v37  ;;  %v5147_v37 = vld [vmem:[#allocation8 + $0x16c] ss:$16 sps:$4 sm:$0xff]  }
 0x19d   :  { %2957 = vmatpush2.bf16.msra.mxu1 %v5196_v55 }
 0x19e   :  { %2958 = vmatprep.subr.bf16.mxu1 %v5201_v60 }
 0x19f   :  { %2918 = vmatpush2.bf16.msra.mxu0 %v5103_v42  ;;  %v5150_v42 = vld [vmem:[#allocation8 + $0x14c] ss:$16 sps:$4 sm:$0xff]  }
 0x1a0   :  { %2919 = vmatprep.subr.bf16.mxu0 %v5108_v45  ;;  %v5153_v45 = vld [vmem:[#allocation8 + $0x12c] ss:$16 sps:$4 sm:$0xff]  }
 0x1a1   :  { %2959 = vmatpush2.bf16.msra.mxu1 %v5199_v63 }
 0x1a2   :  { %2960 = vmatprep.subr.bf16.mxu1 %v5204_v5 }
 0x1a3   :  { %2920 = vmatpush2.bf16.msra.mxu0 %v5106_v51 }
 0x1a4   :  { %2971 = vmatprep.subr.bf16.mxu0 %v5111_v52  ;;  %v5156_v52 = vld [vmem:[#allocation8 + $0x10c] ss:$16 sps:$4 sm:$0xff]  }
 0x1a5   :  { %2961 = vmatpush2.bf16.msra.mxu1 %v5202_v7 }
 0x1a6   :  { %v1879_v32 = vpop.f32.mrf.mxu0  ;;  %3012 = vmatprep.subr.bf16.mxu1 %v5207_v11 }
 0x1a7   :  { %v1920_v53 = vpop.f32.mrf.mxu1  ;;  %v1880_v58 = vadd.f32 %v1879_v32, %v1839_v31 }
 0x1a8   :  { %v1881_v49 = vpop.f32.mrf.mxu0 }
 0x1a9   :  { %v1922_v59 = vpop.f32.mrf.mxu1  ;;  %v1921_v61 = vadd.f32 %v1920_v53, %v1880_v58  ;;  %v1882_v46 = vadd.f32 %v1881_v49, %v1841_v57  ;;  %v473_v53 = vsub.s32 2, %v5731_v43  ;;  %v477_v57 = vsub.s32 3, %v5731_v43  ;;  %v5352_v43 = vld [vmem:[#allocation11 + $0x60] ss:$8 sps:$4 sm:$0xff]  }
 0x1aa   :  { %v1883_v0 = vpop.f32.mrf.mxu0 }
 0x1ab   :  { %v1924_v1 = vpop.f32.mrf.mxu1  ;;  %v1923_v48 = vadd.f32 %v1922_v59, %v1882_v46  ;;  %v2091_v2 = vmax.f32 %v1921_v61, 0.0  ;;  %v474_v58 = vrot.slane %v5795_v39, %v473_v53  ;;  %v478_v49 = vrot.slane %v5795_v39, %v477_v57  ;;  %v5205_v39 = vld [vmem:[#allocation8 + $0x2e8] ss:$16 sps:$4 sm:$0xff]  }
 0x1ac   :  { %v1884_v4 = vpop.f32.mrf.mxu0 }
 0x1ad   :  { %v1925_v47 = vpop.f32.mrf.mxu1  ;;  %v2092_v6 = vmax.f32 %v1923_v48, 0.0  ;;  %v5808_v9 = vpack.c.bf16 %v2091_v2, %v2091_v2 }
 0x1af   :  { %v2096_v50 = vpack.c.bf16 %v2092_v6, %v2092_v6 }
 0x1b1   :  { %2921 = vmatprep.mubr.bf16.mxu0 %v2096_v50 }
 0x1b2   :  { %2922 = vmatmul.mubr.bf16.vlgmr.msra.gmra.mxu0 %v5808_v9 }
 0x1b3   :  { %2972 = vmatpush1.bf16.msra.mxu0 %v5109_v8  ;;  %3003 = vmatprep.mubr.bf16.mxu0 %v2096_v50 }
 0x1b4   :  { %2973 = vmatprep.subr.bf16.mxu0 %v5114_v10 }
 0x1b7   :  { %2974 = vmatpush1.bf16.msra.mxu0 %v5112_v12 }
 0x1b8   :  { %2975 = vmatprep.subr.bf16.mxu0 %v5117_v13  ;;  %v5210_v13 = vld [vmem:[#allocation8 + $0x2cc] ss:$16 sps:$4 sm:$0xff]  }
 0x1bb   :  { %2976 = vmatpush1.bf16.msra.mxu0 %v5115_v14  ;;  %v5208_v14 = vld [vmem:[#allocation8 + $0x2c8] ss:$16 sps:$4 sm:$0xff]  }
 0x1bc   :  { %2977 = vmatprep.subr.bf16.mxu0 %v5120_v15  ;;  %v5213_v15 = vld [vmem:[#allocation8 + $0x2ac] ss:$16 sps:$4 sm:$0xff]  }
 0x1bf   :  { %2978 = vmatpush1.bf16.msra.mxu0 %v5118_v18  ;;  %v5211_v18 = vld [vmem:[#allocation8 + $0x2a8] ss:$16 sps:$4 sm:$0xff]  }
 0x1c0   :  { %2979 = vmatprep.subr.bf16.mxu0 %v5123_v19  ;;  %v5216_v19 = vld [vmem:[#allocation8 + $0x28c] ss:$16 sps:$4 sm:$0xff]  }
 0x1c3   :  { %2980 = vmatpush1.bf16.msra.mxu0 %v5121_v20  ;;  %v5253_v20 = vld [vmem:[#allocation10 + $0x70] ss:$8 sps:$4 sm:$0xff]  }
 0x1c4   :  { %2981 = vmatprep.subr.bf16.mxu0 %v5126_v21  ;;  %v5255_v21 = vld [vmem:[#allocation10 + $0x74] ss:$8 sps:$4 sm:$0xff]  }
 0x1c7   :  { %2982 = vmatpush1.bf16.msra.mxu0 %v5124_v22  ;;  %v5258_v22 = vld [vmem:[#allocation10 + $0x64] ss:$8 sps:$4 sm:$0xff]  }
 0x1c8   :  { %2983 = vmatprep.subr.bf16.mxu0 %v5129_v23  ;;  %v5214_v23 = vld [vmem:[#allocation8 + $0x288] ss:$16 sps:$4 sm:$0xff]  }
 0x1cb   :  { %2984 = vmatpush1.bf16.msra.mxu0 %v5127_v24  ;;  %v5256_v24 = vld [vmem:[#allocation10 + $0x60] ss:$8 sps:$4 sm:$0xff]  }
 0x1cc   :  { %2985 = vmatprep.subr.bf16.mxu0 %v5132_v25  ;;  %v5219_v25 = vld [vmem:[#allocation8 + $0x26c] ss:$16 sps:$4 sm:$0xff]  }
 0x1cf   :  { %2986 = vmatpush1.bf16.msra.mxu0 %v5130_v26  ;;  %v5261_v26 = vld [vmem:[#allocation10 + $0x54] ss:$8 sps:$4 sm:$0xff]  }
 0x1d0   :  { %2987 = vmatprep.subr.bf16.mxu0 %v5135_v27  ;;  %v5217_v27 = vld [vmem:[#allocation8 + $0x268] ss:$16 sps:$4 sm:$0xff]  }
 0x1d3   :  { %2988 = vmatpush2.bf16.msra.mxu0 %v5133_v28  ;;  %v5259_v28 = vld [vmem:[#allocation10 + $0x50] ss:$8 sps:$4 sm:$0xff]  }
 0x1d4   :  { %2989 = vmatprep.subr.bf16.mxu0 %v5138_v29  ;;  %v5222_v29 = vld [vmem:[#allocation8 + $0x24c] ss:$16 sps:$4 sm:$0xff]  }
 0x1d7   :  { %2990 = vmatpush2.bf16.msra.mxu0 %v5136_v30  ;;  %v5264_v30 = vld [vmem:[#allocation10 + $0x44] ss:$8 sps:$4 sm:$0xff]  }
 0x1d8   :  { %2991 = vmatprep.subr.bf16.mxu0 %v5141_v33  ;;  %v5220_v33 = vld [vmem:[#allocation8 + $0x248] ss:$16 sps:$4 sm:$0xff]  }
 0x1db   :  { %2992 = vmatpush2.bf16.msra.mxu0 %v5139_v34  ;;  %v5262_v34 = vld [vmem:[#allocation10 + $0x40] ss:$8 sps:$4 sm:$0xff]  }
 0x1dc   :  { %2993 = vmatprep.subr.bf16.mxu0 %v5144_v35  ;;  %v5225_v35 = vld [vmem:[#allocation8 + $0x22c] ss:$16 sps:$4 sm:$0xff]  }
 0x1df   :  { %2994 = vmatpush2.bf16.msra.mxu0 %v5142_v36  ;;  %v5267_v36 = vld [vmem:[#allocation10 + $0x34] ss:$8 sps:$4 sm:$0xff]  }
 0x1e0   :  { %2995 = vmatprep.subr.bf16.mxu0 %v5147_v37  ;;  %v5223_v37 = vld [vmem:[#allocation8 + $0x228] ss:$16 sps:$4 sm:$0xff]  }
 0x1e3   :  { %2996 = vmatpush2.bf16.msra.mxu0 %v5145_v40  ;;  %v5265_v40 = vld [vmem:[#allocation10 + $0x30] ss:$8 sps:$4 sm:$0xff]  }
 0x1e4   :  { %2997 = vmatprep.subr.bf16.mxu0 %v5150_v42  ;;  %v5228_v42 = vld [vmem:[#allocation8 + $0x20c] ss:$16 sps:$4 sm:$0xff]  }
 0x1e6   :  { %v1961_v62 = vpop.f32.mrf.mxu0 }
 0x1e7   :  { %v2002_v3 = vpop.f32.mrf.mxu1  ;;  %2998 = vmatpush2.bf16.msra.mxu0 %v5148_v44  ;;  %v1962_v59 = vadd.f32 %v1961_v62, %v474_v58  ;;  %v5270_v44 = vld [vmem:[#allocation10 + $0x24] ss:$8 sps:$4 sm:$0xff]   ;;  %v5268_v62 = vld [vmem:[#allocation10 + $0x20] ss:$8 sps:$4 sm:$0xff]  }
 0x1e8   :  { %v1963_v51 = vpop.f32.mrf.mxu0  ;;  %2999 = vmatprep.subr.bf16.mxu0 %v5153_v45  ;;  %v5226_v45 = vld [vmem:[#allocation8 + $0x208] ss:$16 sps:$4 sm:$0xff]  }
 0x1e9   :  { %v2004_v17 = vpop.f32.mrf.mxu1  ;;  %v1964_v60 = vadd.f32 %v1963_v51, %v478_v49  ;;  %v2003_v61 = vadd.f32 %v2002_v3, %v1962_v59  ;;  %v5231_v3 = vld [vmem:[#allocation8 + $0x3ec] ss:$16 sps:$4 sm:$0xff]   ;;  %v5229_v51 = vld [vmem:[#allocation8 + $0x3e8] ss:$16 sps:$4 sm:$0xff]  }
 0x1ea   :  { %v1965_v54 = vpop.f32.mrf.mxu0  ;;  %v5235_v58 = vld [vmem:[#allocation8 + $0x3a8] ss:$16 sps:$4 sm:$0xff]   ;;  %v5240_v59 = vld [vmem:[#allocation8 + $0x38c] ss:$16 sps:$4 sm:$0xff]  }
 0x1eb   :  { %v2006_v55 = vpop.f32.mrf.mxu1  ;;  %3000 = vmatpush2.bf16.msra.mxu0 %v5151_v16  ;;  %v2005_v0 = vadd.f32 %v2004_v17, %v1964_v60  ;;  %v5273_v16 = vld [vmem:[#allocation10 + $0x14] ss:$8 sps:$4 sm:$0xff]   ;;  %v5271_v17 = vld [vmem:[#allocation10 + $0x10] ss:$8 sps:$4 sm:$0xff]   ;;  %v5276_v54 = vld [vmem:[#allocation10 + $0x4] ss:$8 sps:$4 sm:$0xff]  }
 0x1ec   :  { %v1966_v31 = vpop.f32.mrf.mxu0  ;;  %3001 = vmatprep.subr.bf16.mxu0 %v5156_v52  ;;  %v5234_v52 = vld [vmem:[#allocation8 + $0x3cc] ss:$16 sps:$4 sm:$0xff]   ;;  %v5232_v55 = vld [vmem:[#allocation8 + $0x3c8] ss:$16 sps:$4 sm:$0xff]  }
 0x1ed   :  { %v2007_v32 = vpop.f32.mrf.mxu1  ;;  %v5237_v31 = vld [vmem:[#allocation8 + $0x3ac] ss:$16 sps:$4 sm:$0xff]   ;;  %v5277_v49 = vld [vmem:[#allocation10 + $0xf0] ss:$8 sps:$4 sm:$0xff]  }
 0x1ee   :  { %v5279_v32 = vld [vmem:[#allocation10 + $0xf4] ss:$8 sps:$4 sm:$0xff]   ;;  %v5282_v60 = vld [vmem:[#allocation10 + $0xe4] ss:$8 sps:$4 sm:$0xff]  }
 0x1ef   :  { %3002 = vmatpush2.bf16.msra.mxu0 %v5154_v56  ;;  %v5274_v56 = vld [vmem:[#allocation10] ss:$8 sps:$4 sm:$0xff]  }
 0x1f0   :  { %3457 = vmatprep.subr.bf16.mxu0 %v5255_v21 }
 0x1f2   :  { %3004 = vmatmul.mubr.bf16.vlgmr.msra.gmra.mxu0 %v5808_v9 }
 0x1f3   :  { %3458 = vmatpush1.bf16.msra.mxu0 %v5253_v20  ;;  %v5300_v20 = vld [vmem:[#allocation10 + $0x84] ss:$8 sps:$4 sm:$0xff]  }
 0x1f4   :  { %3459 = vmatprep.subr.bf16.mxu0 %v5258_v22  ;;  %v5298_v22 = vld [vmem:[#allocation10 + $0x80] ss:$8 sps:$4 sm:$0xff]  }
 0x1f7   :  { %3460 = vmatpush1.bf16.msra.mxu0 %v5256_v24  ;;  %v5301_v24 = vld [vmem:[#allocation10 + $0x170] ss:$8 sps:$4 sm:$0xff]  }
 0x1f8   :  { %3461 = vmatprep.subr.bf16.mxu0 %v5261_v26  ;;  %v5309_v26 = vld [vmem:[#allocation10 + $0x154] ss:$8 sps:$4 sm:$0xff]  }
 0x1fb   :  { %3462 = vmatpush1.bf16.msra.mxu0 %v5259_v28  ;;  %v5312_v28 = vld [vmem:[#allocation10 + $0x144] ss:$8 sps:$4 sm:$0xff]  }
 0x1fc   :  { %3463 = vmatprep.subr.bf16.mxu0 %v5264_v30  ;;  %v5315_v30 = vld [vmem:[#allocation10 + $0x134] ss:$8 sps:$4 sm:$0xff]  }
 0x1ff   :  { %3464 = vmatpush1.bf16.msra.mxu0 %v5262_v34  ;;  %v5318_v34 = vld [vmem:[#allocation10 + $0x124] ss:$8 sps:$4 sm:$0xff]  }
 0x200   :  { %3465 = vmatprep.subr.bf16.mxu0 %v5267_v36  ;;  %v5321_v36 = vld [vmem:[#allocation10 + $0x114] ss:$8 sps:$4 sm:$0xff]  }
 0x203   :  { %3466 = vmatpush1.bf16.msra.mxu0 %v5265_v40  ;;  %v5324_v40 = vld [vmem:[#allocation10 + $0x104] ss:$8 sps:$4 sm:$0xff]  }
 0x204   :  { %3467 = vmatprep.subr.bf16.mxu0 %v5270_v44  ;;  %v5327_v44 = vld [vmem:[#allocation10 + $0x1f4] ss:$8 sps:$4 sm:$0xff]  }
 0x207   :  { %3468 = vmatpush1.bf16.msra.mxu0 %v5268_v62  ;;  %v5330_v62 = vld [vmem:[#allocation10 + $0x1e4] ss:$8 sps:$4 sm:$0xff]  }
 0x208   :  { %3469 = vmatprep.subr.bf16.mxu0 %v5273_v16  ;;  %v5333_v16 = vld [vmem:[#allocation10 + $0x1d4] ss:$8 sps:$4 sm:$0xff]  }
 0x20b   :  { %3470 = vmatpush1.bf16.msra.mxu0 %v5271_v17  ;;  %v5336_v17 = vld [vmem:[#allocation10 + $0x1c4] ss:$8 sps:$4 sm:$0xff]  }
 0x20c   :  { %3471 = vmatprep.subr.bf16.mxu0 %v5276_v54  ;;  %v5339_v54 = vld [vmem:[#allocation10 + $0x1b4] ss:$8 sps:$4 sm:$0xff]  }
 0x20f   :  { %3472 = vmatpush1.bf16.msra.mxu0 %v5274_v56  ;;  %v5342_v56 = vld [vmem:[#allocation10 + $0x1a4] ss:$8 sps:$4 sm:$0xff]  }
 0x210   :  { %3473 = vmatprep.subr.bf16.mxu0 %v5279_v32 }
 0x213   :  { %3474 = vmatpush2.bf16.msra.mxu0 %v5277_v49  ;;  %v5343_v49 = vld [vmem:[#allocation10 + $0x190] ss:$8 sps:$4 sm:$0xff]  }
 0x214   :  { %3475 = vmatprep.subr.bf16.mxu0 %v5282_v60 }
 0x226   :  { %v2043_v46 = vpop.f32.mrf.mxu0 }
 0x227   :  { %v2084_v63 = vpop.f32.mrf.mxu1  ;;  %v2044_v1 = vadd.f32 %v2043_v46, %v2003_v61  ;;  %v5238_v61 = vld [vmem:[#allocation8 + $0x388] ss:$16 sps:$4 sm:$0xff]  }
 0x228   :  { %v2045_v48 = vpop.f32.mrf.mxu0  ;;  %v5280_v46 = vld [vmem:[#allocation10 + $0xe0] ss:$8 sps:$4 sm:$0xff]  }
 0x229   :  { %v2086_v2 = vpop.f32.mrf.mxu1  ;;  %v2085_v4 = vadd.f32 %v2084_v63, %v2044_v1  ;;  %v2046_v47 = vadd.f32 %v2045_v48, %v2005_v0  ;;  %v5243_v63 = vld [vmem:[#allocation8 + $0x36c] ss:$16 sps:$4 sm:$0xff]   ;;  %v5241_v1 = vld [vmem:[#allocation8 + $0x368] ss:$16 sps:$4 sm:$0xff]   ;;  %3476 = vmatpush2.bf16.msra.mxu0 %v5280_v46 }
 0x22a   :  { %v2047_v5 = vpop.f32.mrf.mxu0  ;;  %v5285_v0 = vld [vmem:[#allocation10 + $0xd4] ss:$8 sps:$4 sm:$0xff]   ;;  %v5283_v48 = vld [vmem:[#allocation10 + $0xd0] ss:$8 sps:$4 sm:$0xff]   ;;  %v5346_v46 = vld [vmem:[#allocation10 + $0x180] ss:$8 sps:$4 sm:$0xff]  }
 0x22b   :  { %v2088_v6 = vpop.f32.mrf.mxu1  ;;  %v2087_v7 = vadd.f32 %v2086_v2, %v2046_v47  ;;  %v2093_v50 = vmax.f32 %v2085_v4, 0.0  ;;  %v5246_v2 = vld [vmem:[#allocation8 + $0x34c] ss:$16 sps:$4 sm:$0xff]   ;;  %3477 = vmatprep.subr.bf16.mxu0 %v5285_v0  ;;  %v5244_v47 = vld [vmem:[#allocation8 + $0x348] ss:$16 sps:$4 sm:$0xff]  }
 0x22c   :  { %v2048_v8 = vpop.f32.mrf.mxu0  ;;  %v5288_v4 = vld [vmem:[#allocation10 + $0xc4] ss:$8 sps:$4 sm:$0xff]   ;;  %v5286_v5 = vld [vmem:[#allocation10 + $0xc0] ss:$8 sps:$4 sm:$0xff]  }
 0x22d   :  { %v2089_v9 = vpop.f32.mrf.mxu1  ;;  %v2094_v10 = vmax.f32 %v2087_v7, 0.0  ;;  %v5820_v12 = vpack.c.bf16 %v2093_v50, %v2093_v50  ;;  %3478 = vmatpush2.bf16.msra.mxu0 %v5283_v48  ;;  %v5249_v6 = vld [vmem:[#allocation8 + $0x32c] ss:$16 sps:$4 sm:$0xff]   ;;  %v5247_v50 = vld [vmem:[#allocation8 + $0x328] ss:$16 sps:$4 sm:$0xff]  }
 0x22e   :  { %3479 = vmatprep.subr.bf16.mxu0 %v5288_v4  ;;  %v5291_v7 = vld [vmem:[#allocation10 + $0xb4] ss:$8 sps:$4 sm:$0xff]   ;;  %v5289_v8 = vld [vmem:[#allocation10 + $0xb0] ss:$8 sps:$4 sm:$0xff]   ;;  %v2227_v0 = vld [vmem:[%s5862_s4] sm:$0xf] }
 0x22f   :  { %v2098_v11 = vpack.c.bf16 %v2094_v10, %v2094_v10  ;;  %v5252_v9 = vld [vmem:[#allocation8 + $0x30c] ss:$16 sps:$4 sm:$0xff]   ;;  %v2236_v48 = vrot.slane %v2227_v0, %v5798_v41 }
 0x230   :  { %v5294_v10 = vld [vmem:[#allocation10 + $0xa4] ss:$8 sps:$4 sm:$0xff]  }
 0x231   :  { %2962 = vmatprep.mubr.bf16.mxu1 %v2098_v11  ;;  %3480 = vmatpush2.bf16.msra.mxu0 %v5286_v5 }
 0x232   :  { %2963 = vmatmul.mubr.bf16.vlgmr.msra.gmra.mxu1 %v5820_v12  ;;  %3481 = vmatprep.subr.bf16.mxu0 %v5291_v7 }
 0x233   :  { %3013 = vmatpush1.bf16.msra.mxu1 %v5205_v39  ;;  %3044 = vmatprep.mubr.bf16.mxu1 %v2098_v11  ;;  %v5250_v11 = vld [vmem:[#allocation8 + $0x308] ss:$16 sps:$4 sm:$0xff]  }
 0x234   :  { %3014 = vmatprep.subr.bf16.mxu1 %v5210_v13  ;;  %v5292_v39 = vld [vmem:[#allocation10 + $0xa0] ss:$8 sps:$4 sm:$0xff]  }
 0x235   :  { %3482 = vmatpush2.bf16.msra.mxu0 %v5289_v8 }
 0x236   :  { %3483 = vmatprep.subr.bf16.mxu0 %v5294_v10 }
 0x237   :  { %3015 = vmatpush1.bf16.msra.mxu1 %v5208_v14  ;;  %v5297_v14 = vld [vmem:[#allocation10 + $0x94] ss:$8 sps:$4 sm:$0xff]  }
 0x238   :  { %3016 = vmatprep.subr.bf16.mxu1 %v5213_v15 }
 0x239   :  { %3484 = vmatpush2.bf16.msra.mxu0 %v5292_v39 }
 0x23a   :  { %3485 = vmatprep.subr.bf16.mxu0 %v5297_v14  ;;  %v2240_v14 = vrot.slane %v2227_v0, %v473_v53  ;;  %v5354_v53 = vld [vmem:[#allocation11 + $0x64] ss:$8 sps:$4 sm:$0xff]  }
 0x23b   :  { %3017 = vmatpush1.bf16.msra.mxu1 %v5211_v18  ;;  %v5295_v18 = vld [vmem:[#allocation10 + $0x90] ss:$8 sps:$4 sm:$0xff]  }
 0x23c   :  { %3018 = vmatprep.subr.bf16.mxu1 %v5216_v19 }
 0x23d   :  { %3486 = vmatpush2.bf16.msra.mxu0 %v5295_v18 }
 0x23e   :  { %3487 = vmatprep.subr.bf16.mxu0 %v5300_v20 }
 0x23f   :  { %3019 = vmatpush1.bf16.msra.mxu1 %v5214_v23  ;;  %v5303_v23 = vld [vmem:[#allocation10 + $0x174] ss:$8 sps:$4 sm:$0xff]  }
 0x240   :  { %3020 = vmatprep.subr.bf16.mxu1 %v5219_v25  ;;  %v5306_v25 = vld [vmem:[#allocation10 + $0x164] ss:$8 sps:$4 sm:$0xff]  }
 0x241   :  { %3488 = vmatpush2.bf16.msra.mxu0 %v5298_v22 }
 0x243   :  { %3021 = vmatpush1.bf16.msra.mxu1 %v5217_v27  ;;  %v5307_v27 = vld [vmem:[#allocation10 + $0x150] ss:$8 sps:$4 sm:$0xff]  }
 0x244   :  { %3022 = vmatprep.subr.bf16.mxu1 %v5222_v29  ;;  %v5310_v29 = vld [vmem:[#allocation10 + $0x140] ss:$8 sps:$4 sm:$0xff]  }
 0x247   :  { %3023 = vmatpush1.bf16.msra.mxu1 %v5220_v33  ;;  %v5313_v33 = vld [vmem:[#allocation10 + $0x130] ss:$8 sps:$4 sm:$0xff]  }
 0x248   :  { %3024 = vmatprep.subr.bf16.mxu1 %v5225_v35  ;;  %v5316_v35 = vld [vmem:[#allocation10 + $0x120] ss:$8 sps:$4 sm:$0xff]  }
 0x24b   :  { %3025 = vmatpush1.bf16.msra.mxu1 %v5223_v37  ;;  %v5319_v37 = vld [vmem:[#allocation10 + $0x110] ss:$8 sps:$4 sm:$0xff]  }
 0x24c   :  { %3026 = vmatprep.subr.bf16.mxu1 %v5228_v42  ;;  %v5322_v42 = vld [vmem:[#allocation10 + $0x100] ss:$8 sps:$4 sm:$0xff]  }
 0x24f   :  { %3027 = vmatpush1.bf16.msra.mxu1 %v5226_v45  ;;  %v5325_v45 = vld [vmem:[#allocation10 + $0x1f0] ss:$8 sps:$4 sm:$0xff]  }
 0x250   :  { %3028 = vmatprep.subr.bf16.mxu1 %v5231_v3  ;;  %v5328_v3 = vld [vmem:[#allocation10 + $0x1e0] ss:$8 sps:$4 sm:$0xff]  }
 0x253   :  { %3029 = vmatpush2.bf16.msra.mxu1 %v5229_v51  ;;  %v5331_v51 = vld [vmem:[#allocation10 + $0x1d0] ss:$8 sps:$4 sm:$0xff]  }
 0x254   :  { %3030 = vmatprep.subr.bf16.mxu1 %v5234_v52  ;;  %v5334_v52 = vld [vmem:[#allocation10 + $0x1c0] ss:$8 sps:$4 sm:$0xff]  }
 0x257   :  { %3031 = vmatpush2.bf16.msra.mxu1 %v5232_v55  ;;  %v5337_v55 = vld [vmem:[#allocation10 + $0x1b0] ss:$8 sps:$4 sm:$0xff]  }
 0x258   :  { %3032 = vmatprep.subr.bf16.mxu1 %v5237_v31  ;;  %v5340_v31 = vld [vmem:[#allocation10 + $0x1a0] ss:$8 sps:$4 sm:$0xff]  }
 0x25b   :  { %3033 = vmatpush2.bf16.msra.mxu1 %v5235_v58  ;;  %v5345_v58 = vld [vmem:[#allocation10 + $0x194] ss:$8 sps:$4 sm:$0xff]  }
 0x25c   :  { %3034 = vmatprep.subr.bf16.mxu1 %v5240_v59 }
 0x25f   :  { %3035 = vmatpush2.bf16.msra.mxu1 %v5238_v61  ;;  %v5348_v61 = vld [vmem:[#allocation10 + $0x184] ss:$8 sps:$4 sm:$0xff]  }
 0x260   :  { %3036 = vmatprep.subr.bf16.mxu1 %v5243_v63 }
 0x263   :  { %3037 = vmatpush2.bf16.msra.mxu1 %v5241_v1  ;;  %v2232_v1 = vrot.slane %v2227_v0, %v5793_v38 }
 0x264   :  { %3038 = vmatprep.subr.bf16.mxu1 %v5246_v2 }
 0x267   :  { %3039 = vmatpush2.bf16.msra.mxu1 %v5244_v47 }
 0x268   :  { %3040 = vmatprep.subr.bf16.mxu1 %v5249_v6 }
 0x26b   :  { %3041 = vmatpush2.bf16.msra.mxu1 %v5247_v50 }
 0x26c   :  { %3042 = vmatprep.subr.bf16.mxu1 %v5252_v9 }
 0x26f   :  { %3043 = vmatpush2.bf16.msra.mxu1 %v5250_v11 }
 0x270   :  { %3498 = vmatprep.subr.bf16.mxu1 %v5303_v23 }
 0x272   :  { %3045 = vmatmul.mubr.bf16.vlgmr.msra.gmra.mxu1 %v5820_v12  ;;  %v5824_v13 = vpop.f32.mrf.mxu0  ;;  %v5304_v12 = vld [vmem:[#allocation10 + $0x160] ss:$8 sps:$4 sm:$0xff]  }
 0x273   :  { %3499 = vmatpush1.bf16.msra.mxu1 %v5301_v24  ;;  %v2924_v2 = vadd.f32 %v5824_v13, %v2232_v1  ;;  %v2244_v13 = vrot.slane %v2227_v0, %v477_v57  ;;  %v5357_v57 = vld [vmem:[#allocation11 + $0x54] ss:$8 sps:$4 sm:$0xff]  }
 0x274   :  { %v5826_v15 = vpop.f32.mrf.mxu0  ;;  %3500 = vmatprep.subr.bf16.mxu1 %v5306_v25  ;;  %v5398_v0 = vld [vmem:[#allocation13 + $0x38] sm:$0xff]   ;;  %v5399_v1 = vld [vmem:[#allocation13 + $0x70] sm:$0xff]  }
 0x275   :  { %v2926_v47 = vadd.f32 %v5826_v15, %v2236_v48  ;;  %v5400_v48 = vld [vmem:[#allocation13 + $0x30] sm:$0xff]  }
 0x276   :  { %v2927_v19 = vpop.f32.mrf.mxu0 }
 0x277   :  { %3501 = vmatpush1.bf16.msra.mxu1 %v5304_v12 }
 0x278   :  { %v2928_v21 = vpop.f32.mrf.mxu0  ;;  %3502 = vmatprep.subr.bf16.mxu1 %v5309_v26 }
 0x27b   :  { %3503 = vmatpush1.bf16.msra.mxu1 %v5307_v27 }
 0x27c   :  { %3504 = vmatprep.subr.bf16.mxu1 %v5312_v28  ;;  %v5349_v28 = vld [vmem:[#allocation11 + $0x70] ss:$8 sps:$4 sm:$0xff]  }
 0x27f   :  { %3505 = vmatpush1.bf16.msra.mxu1 %v5310_v29  ;;  %v5351_v29 = vld [vmem:[#allocation11 + $0x74] ss:$8 sps:$4 sm:$0xff]  }
 0x280   :  { %3506 = vmatprep.subr.bf16.mxu1 %v5315_v30  ;;  %3747 = vmatprep.subr.bf16.mxu0 %v5351_v29  ;;  %v5355_v30 = vld [vmem:[#allocation11 + $0x50] ss:$8 sps:$4 sm:$0xff]   ;;  %v5409_v29 = vld [vmem:[#allocation13 + $0x48] sm:$0xff]  }
 0x283   :  { %3507 = vmatpush1.bf16.msra.mxu1 %v5313_v33  ;;  %v5360_v33 = vld [vmem:[#allocation11 + $0x44] ss:$8 sps:$4 sm:$0xff]  }
 0x284   :  { %3508 = vmatprep.subr.bf16.mxu1 %v5318_v34  ;;  %v5358_v34 = vld [vmem:[#allocation11 + $0x40] ss:$8 sps:$4 sm:$0xff]  }
 0x287   :  { %3509 = vmatpush1.bf16.msra.mxu1 %v5316_v35  ;;  %v5363_v35 = vld [vmem:[#allocation11 + $0x34] ss:$8 sps:$4 sm:$0xff]  }
 0x288   :  { %3510 = vmatprep.subr.bf16.mxu1 %v5321_v36  ;;  %v5361_v36 = vld [vmem:[#allocation11 + $0x30] ss:$8 sps:$4 sm:$0xff]  }
 0x28b   :  { %3511 = vmatpush1.bf16.msra.mxu1 %v5319_v37  ;;  %v5366_v37 = vld [vmem:[#allocation11 + $0x24] ss:$8 sps:$4 sm:$0xff]  }
 0x28c   :  { %3512 = vmatprep.subr.bf16.mxu1 %v5324_v40  ;;  %v5364_v40 = vld [vmem:[#allocation11 + $0x20] ss:$8 sps:$4 sm:$0xff]  }
 0x28f   :  { %3513 = vmatpush1.bf16.msra.mxu1 %v5322_v42  ;;  %v5369_v42 = vld [vmem:[#allocation11 + $0x14] ss:$8 sps:$4 sm:$0xff]  }
 0x290   :  { %3514 = vmatprep.subr.bf16.mxu1 %v5327_v44  ;;  %v5367_v44 = vld [vmem:[#allocation11 + $0x10] ss:$8 sps:$4 sm:$0xff]  }
 0x293   :  { %3515 = vmatpush2.bf16.msra.mxu1 %v5325_v45  ;;  %v5372_v45 = vld [vmem:[#allocation11 + $0x4] ss:$8 sps:$4 sm:$0xff]  }
 0x294   :  { %3516 = vmatprep.subr.bf16.mxu1 %v5330_v62  ;;  %v5370_v62 = vld [vmem:[#allocation11] ss:$8 sps:$4 sm:$0xff]  }
 0x297   :  { %3517 = vmatpush2.bf16.msra.mxu1 %v5328_v3  ;;  %v5375_v3 = vld [vmem:[#allocation11 + $0xf4] ss:$8 sps:$4 sm:$0xff]  }
 0x298   :  { %3518 = vmatprep.subr.bf16.mxu1 %v5333_v16  ;;  %v5373_v16 = vld [vmem:[#allocation11 + $0xf0] ss:$8 sps:$4 sm:$0xff]  }
 0x29b   :  { %3519 = vmatpush2.bf16.msra.mxu1 %v5331_v51  ;;  %v5378_v51 = vld [vmem:[#allocation11 + $0xe4] ss:$8 sps:$4 sm:$0xff]  }
 0x29c   :  { %3520 = vmatprep.subr.bf16.mxu1 %v5336_v17  ;;  %v5376_v17 = vld [vmem:[#allocation11 + $0xe0] ss:$8 sps:$4 sm:$0xff]  }
 0x29f   :  { %3521 = vmatpush2.bf16.msra.mxu1 %v5334_v52  ;;  %v5381_v52 = vld [vmem:[#allocation11 + $0xd4] ss:$8 sps:$4 sm:$0xff]  }
 0x2a0   :  { %3522 = vmatprep.subr.bf16.mxu1 %v5339_v54  ;;  %v5379_v54 = vld [vmem:[#allocation11 + $0xd0] ss:$8 sps:$4 sm:$0xff]  }
 0x2a3   :  { %3523 = vmatpush2.bf16.msra.mxu1 %v5337_v55  ;;  %v5384_v55 = vld [vmem:[#allocation11 + $0xc4] ss:$8 sps:$4 sm:$0xff]  }
 0x2a4   :  { %3524 = vmatprep.subr.bf16.mxu1 %v5342_v56  ;;  %v5382_v56 = vld [vmem:[#allocation11 + $0xc0] ss:$8 sps:$4 sm:$0xff]  }
 0x2a7   :  { %3525 = vmatpush2.bf16.msra.mxu1 %v5340_v31  ;;  %v5387_v31 = vld [vmem:[#allocation11 + $0xb4] ss:$8 sps:$4 sm:$0xff]  }
 0x2a8   :  { %3526 = vmatprep.subr.bf16.mxu1 %v5345_v58  ;;  %v5390_v58 = vld [vmem:[#allocation11 + $0xa4] ss:$8 sps:$4 sm:$0xff]  }
 0x2ab   :  { %3527 = vmatpush2.bf16.msra.mxu1 %v5343_v49  ;;  %v5388_v49 = vld [vmem:[#allocation11 + $0xa0] ss:$8 sps:$4 sm:$0xff]  }
 0x2ac   :  { %3528 = vmatprep.subr.bf16.mxu1 %v5348_v61  ;;  %v5396_v61 = vld [vmem:[#allocation11 + $0x84] ss:$8 sps:$4 sm:$0xff]  }
 0x2af   :  { %3529 = vmatpush2.bf16.msra.mxu1 %v5346_v46  ;;  %v5394_v46 = vld [vmem:[#allocation11 + $0x80] ss:$8 sps:$4 sm:$0xff]  }
 0x2b2   :  { %v3005_v32 = vpop.f32.mrf.mxu0 }
 0x2b3   :  { %v3006_v18 = vadd.f32 %v3005_v32, %v2240_v14  ;;  %v5385_v32 = vld [vmem:[#allocation11 + $0xb0] ss:$8 sps:$4 sm:$0xff]   ;;  %v3125_v14 = vld [vmem:[%s5864_s6] sm:$0x3] }
 0x2b4   :  { %v3007_v59 = vpop.f32.mrf.mxu0 }
 0x2b5   :  { %v3008_v15 = vadd.f32 %v3007_v59, %v2244_v13  ;;  %v5393_v59 = vld [vmem:[#allocation11 + $0x94] ss:$8 sps:$4 sm:$0xff]   ;;  %v3130_v13 = vrot.slane %v3125_v14, %v5793_v38 }
 0x2b6   :  { %v3009_v60 = vpop.f32.mrf.mxu0 }
 0x2b7   :  { %v5391_v60 = vld [vmem:[#allocation11 + $0x90] ss:$8 sps:$4 sm:$0xff]  }
 0x2b8   :  { %v3010_v63 = vpop.f32.mrf.mxu0 }
 0x2b9   :  { %v5397_v63 = vld [vmem:[#allocation13 + $0x78] sm:$0xff]  }
 0x2ba   :  { %4606 = vmatprep.subr.bf16.mxu1 %v5397_v63 }
 0x2f2   :  { %v2964_v4 = vpop.f32.mrf.mxu1 }
 0x2f3   :  { %v2965_v5 = vadd.f32 %v2964_v4, %v2924_v2  ;;  %v5401_v2 = vld [vmem:[#allocation13 + $0x68] sm:$0xff]  }
 0x2f4   :  { %v2966_v6 = vpop.f32.mrf.mxu1  ;;  %v5402_v4 = vld [vmem:[#allocation13 + $0x28] sm:$0xff]  }
 0x2f5   :  { %v2967_v7 = vadd.f32 %v2966_v6, %v2926_v47  ;;  %v3053_v50 = vmax.f32 %v2965_v5, 0.0  ;;  %v5403_v47 = vld [vmem:[#allocation13 + $0x60] sm:$0xff]   ;;  %v5405_v6 = vld [vmem:[#allocation13 + $0x58] sm:$0xff]  }
 0x2f6   :  { %v2968_v8 = vpop.f32.mrf.mxu1  ;;  %v5404_v5 = vld [vmem:[#allocation13 + $0x20] sm:$0xff]  }
 0x2f7   :  { %v3054_v9 = vmax.f32 %v2967_v7, 0.0  ;;  %v3057_v39 = vpack.c.bf16 %v3053_v50, %v3053_v50  ;;  %v5406_v7 = vld [vmem:[#allocation13 + $0x18] sm:$0xff]   ;;  %v5407_v50 = vld [vmem:[#allocation13 + $0x50] sm:$0xff]  }
 0x2f8   :  { %v2969_v10 = vpop.f32.mrf.mxu1  ;;  %v5408_v8 = vld [vmem:[#allocation13 + $0x10] sm:$0xff]  }
 0x2f9   :  { %v3058_v11 = vpack.c.bf16 %v3054_v9, %v3054_v9 }
 0x2fb   :  { %3489 = vmatprep.mubr.bf16.mxu0 %v3058_v11 }
 0x2fc   :  { %3490 = vmatmul.mubr.bf16.vlgmr.msra.gmra.mxu0 %v3057_v39 }
 0x2fd   :  { %3748 = vmatpush1.bf16.msra.mxu0 %v5349_v28 }
 0x2fe   :  { %3749 = vmatprep.subr.bf16.mxu0 %v5354_v53  ;;  %v5410_v53 = vld [vmem:[#allocation13 + $0x8] sm:$0xff]  }
 0x301   :  { %3750 = vmatpush1.bf16.msra.mxu0 %v5352_v43  ;;  %v5411_v43 = vld [vmem:[#allocation13 + $0x40] sm:$0xff]  }
 0x302   :  { %3751 = vmatprep.subr.bf16.mxu0 %v5357_v57  ;;  %v5412_v57 = vld [vmem:[#allocation13] sm:$0xff]  }
 0x305   :  { %3752 = vmatpush1.bf16.msra.mxu0 %v5355_v30  ;;  %v5628_v30 = vmov 0.0  }
 0x306   :  { %3753 = vmatprep.subr.bf16.mxu0 %v5360_v33  ;;  %v3575_v33 = vld [vmem:[%s5866_s8] sm:$0x3] }
 0x309   :  { %3754 = vmatpush1.bf16.msra.mxu0 %v5358_v34  ;;  %v3580_v34 = vrot.slane %v3575_v33, %v5793_v38  ;;  %v5415_v38 = vld [vmem:[#allocation14 + $0x28] sm:$0xff]  }
 0x30a   :  { %3755 = vmatprep.subr.bf16.mxu0 %v5363_v35  ;;  %v3584_v35 = vrot.slane %v3575_v33, %v5798_v41 }
 0x30d   :  { %3756 = vmatpush1.bf16.msra.mxu0 %v5361_v36 }
 0x30e   :  { %3757 = vmatprep.subr.bf16.mxu0 %v5366_v37 }
 0x311   :  { %3758 = vmatpush1.bf16.msra.mxu0 %v5364_v40 }
 0x312   :  { %3759 = vmatprep.subr.bf16.mxu0 %v5369_v42 }
 0x315   :  { %3760 = vmatpush1.bf16.msra.mxu0 %v5367_v44 }
 0x316   :  { %3761 = vmatprep.subr.bf16.mxu0 %v5372_v45 }
 0x319   :  { %3762 = vmatpush1.bf16.msra.mxu0 %v5370_v62 }
 0x31a   :  { %3763 = vmatprep.subr.bf16.mxu0 %v5375_v3 }
 0x31d   :  { %3764 = vmatpush2.bf16.msra.mxu0 %v5373_v16 }
 0x31e   :  { %3765 = vmatprep.subr.bf16.mxu0 %v5378_v51  ;;  %v5413_v51 = vld [vmem:[#allocation14 + $0x38] sm:$0xff]  }
 0x321   :  { %3766 = vmatpush2.bf16.msra.mxu0 %v5376_v17 }
 0x322   :  { %3767 = vmatprep.subr.bf16.mxu0 %v5381_v52  ;;  %v5414_v52 = vld [vmem:[#allocation14 + $0x30] sm:$0xff]  }
 0x325   :  { %3768 = vmatpush2.bf16.msra.mxu0 %v5379_v54  ;;  %v5417_v54 = vld [vmem:[#allocation14 + $0x18] sm:$0xff]  }
 0x326   :  { %3769 = vmatprep.subr.bf16.mxu0 %v5384_v55  ;;  %v5418_v55 = vld [vmem:[#allocation14 + $0x10] sm:$0xff]  }
 0x329   :  { %3770 = vmatpush2.bf16.msra.mxu0 %v5382_v56  ;;  %v5419_v56 = vld [vmem:[#allocation14 + $0x8] sm:$0xff]  }
 0x32a   :  { %3771 = vmatprep.subr.bf16.mxu0 %v5387_v31  ;;  %v5420_v31 = vld [vmem:[#allocation14] sm:$0xff]  }
 0x32d   :  { %3772 = vmatpush2.bf16.msra.mxu0 %v5385_v32 }
 0x32e   :  { %3773 = vmatprep.subr.bf16.mxu0 %v5390_v58  ;;  %v4580_v58 = vld [vmem:[%s5868_s10] ss:$0 sm:$0xff]  ;;  %s5581_s10 = scalar_lea.vmem %s4088_s7, 32 }
 0x32f   :  { %p5582_p12 = scmp.ne.s32.totalorder %s4088_s7, %s5581_s10  ;;  %p5587_p0 = scmp.lt.s32.totalorder %s5581_s10, %s5581_s10 }
 0x331   :  { %3774 = vmatpush2.bf16.msra.mxu0 %v5388_v49  ;;  %p5588_p1 = por %p5587_p0, %p5586_p13 }
 0x332   :  { %v3046_v19 = vpop.f32.mrf.mxu1  ;;  %3775 = vmatprep.subr.bf16.mxu0 %v5393_v59 }
 0x333   :  { %v3047_v20 = vadd.f32 %v3046_v19, %v3006_v18  ;;  %v3134_v18 = vrot.slane %v3125_v14, %v5798_v41  ;;  %v5416_v41 = vld [vmem:[#allocation14 + $0x20] sm:$0xff]   ;;  %p5589_p2 = pnand %p5588_p1, %p5582_p12 }
 0x334   :  { %v3048_v21 = vpop.f32.mrf.mxu1 }
 0x335   :  { %v3049_v22 = vadd.f32 %v3048_v21, %v3008_v15  ;;  %v3055_v23 = vmax.f32 %v3047_v20, 0.0  ;;  %3776 = vmatpush2.bf16.msra.mxu0 %v5391_v60 }
 0x336   :  { %v3050_v24 = vpop.f32.mrf.mxu1  ;;  %3777 = vmatprep.subr.bf16.mxu0 %v5396_v61 }
 0x337   :  { %v3056_v25 = vmax.f32 %v3049_v22, 0.0  ;;  %v3059_v27 = vpack.c.bf16 %v3055_v23, %v3055_v23 }
 0x338   :  { %v3051_v12 = vpop.f32.mrf.mxu1 }
 0x339   :  { %v3060_v26 = vpack.c.bf16 %v3056_v25, %v3056_v25  ;;  %3778 = vmatpush2.bf16.msra.mxu0 %v5394_v46 }
 0x33b   :  { %3530 = vmatprep.mubr.bf16.mxu1 %v3060_v26 }
 0x33c   :  { %3531 = vmatmul.mubr.bf16.vlgmr.msra.gmra.mxu1 %v3059_v27 }
 0x33d   :  { %4607 = vmatpush3.bf16.msra.mxu1 %v5398_v0 }
 0x33e   :  { %4608 = vmatprep.subr.bf16.mxu1 %v5399_v1  ;;  %v4597_v1 = vld [vmem:[%s5870_s12] ss:$0 sm:$0xff] }
 0x341   :  { %4609 = vmatpush3.bf16.msra.mxu1 %v5400_v48 }
 0x342   :  { %4610 = vmatprep.subr.bf16.mxu1 %v5401_v2 }
 0x345   :  { %4611 = vmatpush3.bf16.msra.mxu1 %v5402_v4 }
 0x346   :  { %4612 = vmatprep.subr.bf16.mxu1 %v5403_v47 }
 0x349   :  { %4613 = vmatpush3.bf16.msra.mxu1 %v5404_v5 }
 0x34a   :  { %4614 = vmatprep.subr.bf16.mxu1 %v5405_v6 }
 0x34d   :  { %4615 = vmatpush3.bf16.msra.mxu1 %v5406_v7 }
 0x34e   :  { %4616 = vmatprep.subr.bf16.mxu1 %v5407_v50 }
 0x351   :  { %4617 = vmatpush3.bf16.msra.mxu1 %v5408_v8 }
 0x352   :  { %4618 = vmatprep.subr.bf16.mxu1 %v5409_v29 }
 0x355   :  { %4619 = vmatpush3.bf16.msra.mxu1 %v5410_v53 }
 0x356   :  { %4620 = vmatprep.subr.bf16.mxu1 %v5411_v43 }
 0x359   :  { %4621 = vmatpush3.bf16.msra.mxu1 %v5412_v57 }
 0x35a   :  { %4637 = vmatprep.subr.bf16.mxu1 %v5628_v30 }
 0x3bc   :  { %v3491_v9 = vpop.f32.mrf.mxu0 }
 0x3bd   :  { %v3492_v19 = vadd.f32 %v3491_v9, %v3130_v13 }
 0x3be   :  { %v3493_v10 = vpop.f32.mrf.mxu0 }
 0x3bf   :  { %v3494_v20 = vadd.f32 %v3493_v10, %v3134_v18 }
 0x3c0   :  { %v3495_v11 = vpop.f32.mrf.mxu0 }
 0x3c2   :  { %v3496_v39 = vpop.f32.mrf.mxu0 }
 0x3fc   :  { %v3532_v15 = vpop.f32.mrf.mxu1 }
 0x3fd   :  { %v3533_v21 = vadd.f32 %v3532_v15, %v3492_v19 }
 0x3fe   :  { %v3534_v22 = vpop.f32.mrf.mxu1 }
 0x3ff   :  { %v3535_v23 = vadd.f32 %v3534_v22, %v3494_v20  ;;  %v3539_v24 = vmax.f32 %v3533_v21, 0.0 }
 0x400   :  { %v3536_v25 = vpop.f32.mrf.mxu1 }
 0x401   :  { %v3540_v12 = vmax.f32 %v3535_v23, 0.0  ;;  %v3541_v28 = vpack.c.bf16 %v3539_v24, %v3539_v24 }
 0x402   :  { %v3537_v26 = vpop.f32.mrf.mxu1 }
 0x403   :  { %v3542_v27 = vpack.c.bf16 %v3540_v12, %v3540_v12 }
 0x405   :  { %3779 = vmatprep.mubr.bf16.mxu0 %v3542_v27 }
 0x406   :  { %3780 = vmatmul.mubr.bf16.vlgmr.msra.gmra.mxu0 %v3541_v28 }
 0x4c6   :  { %v3781_v36 = vpop.f32.mrf.mxu0 }
 0x4c7   :  { %v3782_v37 = vadd.f32 %v3781_v36, %v3580_v34 }
 0x4c8   :  { %v3783_v40 = vpop.f32.mrf.mxu0 }
 0x4c9   :  { %v3784_v42 = vadd.f32 %v3783_v40, %v3584_v35  ;;  %v3788_v44 = vmax.f32 %v3782_v37, 0.0 }
 0x4ca   :  { %v3785_v45 = vpop.f32.mrf.mxu0 }
 0x4cb   :  { %v3789_v62 = vmax.f32 %v3784_v42, 0.0  ;;  %v3790_v17 = vpack.c.bf16 %v3788_v44, %v3788_v44 }
 0x4cc   :  { %v3786_v3 = vpop.f32.mrf.mxu0 }
 0x4cd   :  { %v3791_v16 = vpack.c.bf16 %v3789_v62, %v3789_v62 }
 0x4cf   :  { %3959 = vmatprep.mubr.bf16.mxu1 %v3791_v16 }
 0x4d0   :  { %3960 = vmatmul.mubr.bf16.vlgmr.msra.gmra.mxu1 %v3790_v17 }
 0x4d1   :  { %4638 = vmatpush3.bf16.msra.mxu1 %v5413_v51  ;;  %4653 = vmatprep.mubr.msk.bf16.mxu1 %vm5629_vm0, %v5628_v30 }
 0x4d2   :  { %4639 = vmatprep.subr.bf16.mxu1 %v5628_v30 }
 0x4d5   :  { %4640 = vmatpush3.bf16.msra.mxu1 %v5414_v52 }
 0x4d6   :  { %4641 = vmatprep.subr.bf16.mxu1 %v5628_v30 }
 0x4d9   :  { %4642 = vmatpush3.bf16.msra.mxu1 %v5415_v38 }
 0x4da   :  { %4643 = vmatprep.subr.bf16.mxu1 %v5628_v30 }
 0x4dd   :  { %4644 = vmatpush3.bf16.msra.mxu1 %v5416_v41 }
 0x4de   :  { %4645 = vmatprep.subr.bf16.mxu1 %v5628_v30 }
 0x4e1   :  { %4646 = vmatpush3.bf16.msra.mxu1 %v5417_v54 }
 0x4e2   :  { %4647 = vmatprep.subr.bf16.mxu1 %v5628_v30 }
 0x4e5   :  { %4648 = vmatpush3.bf16.msra.mxu1 %v5418_v55 }
 0x4e6   :  { %4649 = vmatprep.subr.bf16.mxu1 %v5628_v30 }
 0x4e9   :  { %4650 = vmatpush3.bf16.msra.mxu1 %v5419_v56 }
 0x4ea   :  { %4651 = vmatprep.subr.bf16.mxu1 %v5628_v30 }
 0x4ed   :  { %4652 = vmatpush3.bf16.msra.mxu1 %v5420_v31 }
 0x590   :  { %v4622_v32 = vpop.f32.mrf.mxu1 }
 0x592   :  { %v4623_v49 = vpop.f32.mrf.mxu1 }
 0x593   :  { %v4624_v59 = vadd.f32 %v4623_v49, %v4622_v32 }
 0x594   :  { %v4625_v60 = vpop.f32.mrf.mxu1 }
 0x595   :  { %v3962_v61 = vadd.f32 %v4624_v59, %v4580_v58 }
 0x596   :  { %v4626_v46 = vpop.f32.mrf.mxu1 }
 0x597   :  { %v3967_v63 = vmax.f32 %v3962_v61, 0.0 }
 0x599   :  { %v3968_v0 = vpack.c.bf16 %v3967_v63, %v3967_v63 }
 0x59b   :  { %4654 = vmatmul.mubr.bf16.vlgmr.msra.gmra.mxu1 %v3968_v0 }
 0x65b   :  { %v4074_v48 = vpop.f32.mrf.mxu1 }
 0x65c   :  { %v4075_v2 = vadd.f32 %v4597_v1, %v4074_v48 }
 0x65d   :  { %v4655_v4 = vpop.f32.mrf.mxu1 }
 0x65e   :  { %4080 = vst [vmem:[#allocation16] sm:$0x3] %v4075_v2 }
 0x65f   :  { %v4077_v47 = vpop.f32.mrf.mxu1 }
 0x660   :  { %5592 = shalt.err (!%p5589_p2)
}
 0x661   :  { %4090 = dma.vmem_to_hbm [thread:$0]  %s4088_s7, 32, %s5871_s13, [#allocation4]   ;;  %v4656_v5 = vpop.f32.mrf.mxu1 }
 0x662   :  { %5611 = dma.done.wait [#allocation4], 32  }
 0x663   :  { %5612 = vsyncadd [#allocation4], 4294967264 }
 0x664   :  { %4094 = vsyncpa [#allocation3], 1 }
 0x665   :  { %4095 = vsyncpa [#allocation6], 1 }
 0x666   :  { %4096 = vsyncpa [#allocation9], 1 }
 0x667   :  { %4097 = vsyncpa [#allocation12], 1 }
 0x668   :  { %4098 = vsyncpa [#allocation15], 1 }
 0x669   :  { %4099 = vsyncpa [#allocation4], 1 }

</bundles_post_ra>
